<compile_context>
chip_gen: v6e
topology: v6e:2x2x1
jax: 0.10.0
libtpu: 0.0.40
codegen_flags: <defaults>
</compile_context>

<pallas_src>
import numpy as np

import jax
import jax.numpy as jnp
from jax.experimental import pallas as pl
from jax.experimental.pallas import tpu as pltpu


# ----------------------------------------------------------------------------
# Model dimensions (identical to the PyTorch ConvolutionalAE configuration)
# ----------------------------------------------------------------------------
INPUT_SHAPE = (16, 16)          # (H, W), 1 input channel
ENC_CONV = [4, 8]               # encoder conv channels
CONNECTOR = (8, 4, 4)           # (C, H, W) after the encoder conv stack -> 128
LATENT = 8


# ----------------------------------------------------------------------------
# Single fused Pallas kernel: whole forward pass, everything resident in VMEM.
# ----------------------------------------------------------------------------
def _conv_ae_kernel(
    x_ref,                                   # (B*16, 16)  rows=(b,h), cols=w
    cw1_ref, rs1_ref, b1_ref, pr1_ref, pc1_ref,      # encoder conv block 1
    cw2_ref, rs2_ref, b2_ref, pr2_ref, pc2_ref,      # encoder conv block 2
    rh_ref, w0h_ref, be0_ref,                        # flatten + enc_mlp0
    w1e_ref, b1e_ref, wl_ref, bl_ref,                # enc_mlp1, latent
    wd0_ref, bd0_ref, wd1_ref, bd1_ref,              # dec_mlp0, dec_mlp1
    sh_ref, wd2h_ref, bd2h_ref,                      # dec_mlp2 + View
    w1blk_ref, bt1_ref, w2blk_ref, bt2_ref,          # tconv1, tconv2
    ll_ref, rr_ref,                                  # sub-pixel interleave
    o_ref,                                           # (B*16, 16)
):
    f32 = jnp.float32
    bf16 = jnp.bfloat16

    def mm(a, b):                    # exact f32 matmul (selection / shift mats)
        return jnp.dot(a, b, preferred_element_type=f32)

    def mm16(a, w_bf16):             # bf16 MXU operands, f32 accumulation
        return jnp.dot(a.astype(bf16), w_bf16, preferred_element_type=f32)

    # ---------------- encoder block 1: conv3x3 + BN + ReLU + maxpool ----------
    x1 = x_ref[...]                                            # (B*16, 16)
    y1 = mm16(mm(rs1_ref[0], x1), cw1_ref[0])                  # ky=0 (row -1)
    y1 += mm16(x1, cw1_ref[1])                                 # ky=1
    y1 += mm16(mm(rs1_ref[1], x1), cw1_ref[2])                 # ky=2 (row +1)
    y1 = jnp.maximum(y1 + b1_ref[...], 0.0)                    # (B*16, 64)

    m1 = jnp.maximum(mm(pr1_ref[0], y1), mm(pr1_ref[1], y1))   # pool rows
    z1 = jnp.maximum(mm(m1, pc1_ref[0]), mm(m1, pc1_ref[1]))   # (B*8, 32)

    # ---------------- encoder block 2: conv3x3 + BN + ReLU + maxpool ----------
    y2 = mm16(mm(rs2_ref[0], z1), cw2_ref[0])
    y2 += mm16(z1, cw2_ref[1])
    y2 += mm16(mm(rs2_ref[1], z1), cw2_ref[2])
    y2 = jnp.maximum(y2 + b2_ref[...], 0.0)                    # (B*8, 64)

    m2 = jnp.maximum(mm(pr2_ref[0], y2), mm(pr2_ref[1], y2))
    z2 = jnp.maximum(mm(m2, pc2_ref[0]), mm(m2, pc2_ref[1]))   # (B*4, 32)

    # ---------------- flatten (torch CHW order folded into W0h) + enc_mlp0 ----
    a = mm16(mm(rh_ref[0], z2), w0h_ref[0])
    a += mm16(mm(rh_ref[1], z2), w0h_ref[1])
    a += mm16(mm(rh_ref[2], z2), w0h_ref[2])
    a += mm16(mm(rh_ref[3], z2), w0h_ref[3])
    a = jnp.maximum(a + be0_ref[...], 0.0)                     # (B, 32)

    # ---------------- enc_mlp1 / latent / dec_mlp0 / dec_mlp1 -----------------
    a = jnp.maximum(mm16(a, w1e_ref[...]) + b1e_ref[...], 0.0)  # (B, 16)
    a = jnp.maximum(mm16(a, wl_ref[...]) + bl_ref[...], 0.0)    # (B, 8) latent
    a = jnp.maximum(mm16(a, wd0_ref[...]) + bd0_ref[...], 0.0)  # (B, 16)
    a = jnp.maximum(mm16(a, wd1_ref[...]) + bd1_ref[...], 0.0)  # (B, 32)

    # ---------------- dec_mlp2 + View([-1, 8, 4, 4]) (permutation folded) -----
    d = mm(sh_ref[0], jnp.maximum(mm16(a, wd2h_ref[0]) + bd2h_ref[0], 0.0))
    d += mm(sh_ref[1], jnp.maximum(mm16(a, wd2h_ref[1]) + bd2h_ref[1], 0.0))
    d += mm(sh_ref[2], jnp.maximum(mm16(a, wd2h_ref[2]) + bd2h_ref[2], 0.0))
    d += mm(sh_ref[3], jnp.maximum(mm16(a, wd2h_ref[3]) + bd2h_ref[3], 0.0))
    # d: (B*4, 32)  rows=(b,h), cols=(w, c)  — connector (8,4,4) in NHWC rows

    # ---------------- decoder tconv1 (k=2,s=2) + BN + ReLU --------------------
    p = jnp.maximum(mm16(d, w1blk_ref[...]) + bt1_ref[...], 0.0)   # (B*4, 64)

    # ---------------- decoder tconv2 (k=2,s=2) + sigmoid ----------------------
    f = jax.nn.sigmoid(mm16(p, w2blk_ref[...]) + bt2_ref[...])     # (B*4, 64)

    # ---------------- sub-pixel interleave to (B*16, 16) ----------------------
    out = mm(ll_ref[0], mm(f, rr_ref[0]))
    out += mm(ll_ref[1], mm(f, rr_ref[1]))
    out += mm(ll_ref[2], mm(f, rr_ref[2]))
    out += mm(ll_ref[3], mm(f, rr_ref[3]))
    o_ref[...] = out.astype(o_ref.dtype)


_CONST_ORDER = (
    "cw1", "rs1", "b1", "pr1", "pc1",
    "cw2", "rs2", "b2", "pr2", "pc2",
    "rh", "w0h", "be0",
    "w1e", "b1e", "wl", "bl", "wd0", "bd0", "wd1", "bd1",
    "sh", "wd2h", "bd2h",
    "w1blk", "bt1", "w2blk", "bt2",
    "ll", "rr",
)


def conv_ae_forward(x_nchw, consts):
    """Full ConvolutionalAE forward in one pallas_call. x_nchw: (B, 1, 16, 16)."""
    B = x_nchw.shape[0]
    H, W = INPUT_SHAPE
    # NCHW (C==1) -> (B*H, W): pure row-major reshape, no transpose needed.
    x2d = x_nchw.reshape(B * H, W).astype(jnp.float32)
    args = (x2d,) + tuple(consts[k] for k in _CONST_ORDER)

    def _zmap(nd):
        return lambda i: (0,) * nd

    out2d = pl.pallas_call(
        _conv_ae_kernel,
        out_shape=jax.ShapeDtypeStruct((B * H, W), jnp.float32),
        grid=(1,),
        in_specs=[pl.BlockSpec(a.shape, _zmap(a.ndim)) for a in args],
        out_specs=pl.BlockSpec((B * H, W), lambda i: (0, 0)),
        compiler_params=pltpu.CompilerParams(
            dimension_semantics=("arbitrary",),
        ),
    )(*args)
    # (B*H, W) -> NCHW, free reshape (single output channel).
    return {"target": out2d.reshape(B, 1, H, W)}


# ----------------------------------------------------------------------------
# Parameter initialization (deterministic, raw PyTorch layouts)
# ----------------------------------------------------------------------------
def init_params(key):
    ks = iter(jax.random.split(key, 64))

    def nrm(shape, s=0.1):
        return np.asarray(s * jax.random.normal(next(ks), shape, jnp.float32))

    def bn(n):
        gamma = np.asarray(1.0 + 0.1 * jax.random.normal(next(ks), (n,), jnp.float32))
        beta = np.asarray(0.05 * jax.random.normal(next(ks), (n,), jnp.float32))
        mean = np.zeros((n,), np.float32)       # running_mean init
        var = np.ones((n,), np.float32)         # running_var init
        return gamma, beta, mean, var

    p = {}
    p["conv1_w"] = nrm((4, 1, 3, 3));   p["conv1_b"] = nrm((4,));   p["conv1_bn"] = bn(4)
    p["conv2_w"] = nrm((8, 4, 3, 3));   p["conv2_b"] = nrm((8,));   p["conv2_bn"] = bn(8)
    p["emlp0_w"] = nrm((32, 128));      p["emlp0_b"] = nrm((32,));  p["emlp0_bn"] = bn(32)
    p["emlp1_w"] = nrm((16, 32));       p["emlp1_b"] = nrm((16,));  p["emlp1_bn"] = bn(16)
    p["lat_w"] = nrm((8, 16));          p["lat_b"] = nrm((8,))
    p["dmlp0_w"] = nrm((16, 8));        p["dmlp0_b"] = nrm((16,));  p["dmlp0_bn"] = bn(16)
    p["dmlp1_w"] = nrm((32, 16));       p["dmlp1_b"] = nrm((32,));  p["dmlp1_bn"] = bn(32)
    p["dmlp2_w"] = nrm((128, 32));      p["dmlp2_b"] = nrm((128,)); p["dmlp2_bn"] = bn(128)
    p["tconv1_w"] = nrm((8, 4, 2, 2));  p["tconv1_b"] = nrm((4,));  p["tconv1_bn"] = bn(4)
    p["tconv2_w"] = nrm((4, 1, 2, 2));  p["tconv2_b"] = nrm((1,))
    return p


# ----------------------------------------------------------------------------
# One-time constant preparation: fold BN, build shift/selection matrices,
# fold all layout permutations into adjacent weights.
# ----------------------------------------------------------------------------
def _bn_fold(bias, bn_stats, eps=1e-5):
    gamma, beta, mean, var = bn_stats
    scale = (gamma / np.sqrt(var + eps)).astype(np.float32)
    return scale, ((bias - mean) * scale + beta).astype(np.float32)


def _conv_col_weight(w_torch, scale, w_sp):
    """(3, Wsp*Cin, Wsp*Cout): per-ky matrices doing the kx window + Cin->Cout
    contraction on a (rows=(b,h), cols=(w,cin)) activation slab. Zero padding
    is encoded by the matrix boundaries (no wraparound)."""
    c_out, c_in = w_torch.shape[0], w_torch.shape[1]
    m = np.zeros((3, w_sp * c_in, w_sp * c_out), np.float32)
    for ky in range(3):
        for wo in range(w_sp):
            for kx in range(3):
                wi = wo + kx - 1
                if 0 <= wi < w_sp:
                    for ci in range(c_in):
                        for co in range(c_out):
                            m[ky, wi * c_in + ci, wo * c_out + co] = (
                                w_torch[co, ci, ky, kx] * scale[co])
    return m


def _row_shift_mats(batch, rows):
    """(2, B*rows, B*rows): row shift by dy=-1 / +1 with zero padding, no
    wraparound across image boundaries."""
    m = np.zeros((2, batch * rows, batch * rows), np.float32)
    for idx, dy in enumerate((-1, 1)):
        for b in range(batch):
            for h in range(rows):
                hs = h + dy
                if 0 <= hs < rows:
                    m[idx, b * rows + h, b * rows + hs] = 1.0
    return m


def _pool_row_sel(batch, rows_in):
    ro = rows_in // 2
    m = np.zeros((2, batch * ro, batch * rows_in), np.float32)
    for dy in range(2):
        for b in range(batch):
            for ho in range(ro):
                m[dy, b * ro + ho, b * rows_in + 2 * ho + dy] = 1.0
    return m


def _pool_col_sel(w_in, chans):
    wo_n = w_in // 2
    m = np.zeros((2, w_in * chans, wo_n * chans), np.float32)
    for dx in range(2):
        for wo in range(wo_n):
            for c in range(chans):
                m[dx, (2 * wo + dx) * chans + c, wo * chans + c] = 1.0
    return m


def build_kernel_constants(p, B):
    f32 = np.float32
    c = {}

    # ---------------- encoder conv block 1 (1 -> 4 channels, 16x16) ----------
    s1, bb1 = _bn_fold(p["conv1_b"], p["conv1_bn"])
    c["cw1"] = _conv_col_weight(p["conv1_w"], s1, 16)        # (3, 16, 64)
    c["rs1"] = _row_shift_mats(B, 16)                        # (2, B*16, B*16)
    c["b1"] = np.tile(bb1, 16)[None, :]                      # (1, 64)
    c["pr1"] = _pool_row_sel(B, 16)                          # (2, B*8, B*16)
    c["pc1"] = _pool_col_sel(16, 4)                          # (2, 64, 32)

    # ---------------- encoder conv block 2 (4 -> 8 channels, 8x8) ------------
    s2, bb2 = _bn_fold(p["conv2_b"], p["conv2_bn"])
    c["cw2"] = _conv_col_weight(p["conv2_w"], s2, 8)         # (3, 32, 64)
    c["rs2"] = _row_shift_mats(B, 8)
    c["b2"] = np.tile(bb2, 8)[None, :]
    c["pr2"] = _pool_row_sel(B, 8)
    c["pc2"] = _pool_col_sel(8, 8)

    # ---------------- flatten (torch c*16+h*4+w order) + enc_mlp0 ------------
    se0, be0 = _bn_fold(p["emlp0_b"], p["emlp0_bn"])
    w0f = p["emlp0_w"].T * se0[None, :]                      # (128, 32)
    rh = np.zeros((4, B, B * 4), f32)
    w0h = np.zeros((4, 32, 32), f32)
    for h in range(4):
        for b in range(B):
            rh[h, b, b * 4 + h] = 1.0
        for w in range(4):
            for ch in range(8):
                w0h[h, w * 8 + ch, :] = w0f[ch * 16 + h * 4 + w, :]
    c["rh"], c["w0h"], c["be0"] = rh, w0h, be0[None, :]

    # ---------------- enc_mlp1 / latent / dec_mlp0 / dec_mlp1 ----------------
    se1, be1 = _bn_fold(p["emlp1_b"], p["emlp1_bn"])
    c["w1e"] = p["emlp1_w"].T * se1[None, :];  c["b1e"] = be1[None, :]
    c["wl"] = p["lat_w"].T;                    c["bl"] = p["lat_b"][None, :]
    sd0, bd0 = _bn_fold(p["dmlp0_b"], p["dmlp0_bn"])
    c["wd0"] = p["dmlp0_w"].T * sd0[None, :];  c["bd0"] = bd0[None, :]
    sd1, bd1 = _bn_fold(p["dmlp1_b"], p["dmlp1_bn"])
    c["wd1"] = p["dmlp1_w"].T * sd1[None, :];  c["bd1"] = bd1[None, :]

    # ---------------- dec_mlp2 + View([-1, 8, 4, 4]) folded ------------------
    sd2, bd2 = _bn_fold(p["dmlp2_b"], p["dmlp2_bn"])
    wd2f = p["dmlp2_w"].T * sd2[None, :]                     # (32, 128)
    sh = np.zeros((4, B * 4, B), f32)
    wd2h = np.zeros((4, 32, 32), f32)
    bd2h = np.zeros((4, 1, 32), f32)
    for h in range(4):
        for b in range(B):
            sh[h, b * 4 + h, b] = 1.0
        for w in range(4):
            for ch in range(8):
                wd2h[h, :, w * 8 + ch] = wd2f[:, ch * 16 + h * 4 + w]
                bd2h[h, 0, w * 8 + ch] = bd2[ch * 16 + h * 4 + w]
    c["sh"], c["wd2h"], c["bd2h"] = sh, wd2h, bd2h

    # ---------------- decoder tconv1 (8 -> 4, k=2, s=2) + BN -----------------
    st1, bt1 = _bn_fold(p["tconv1_b"], p["tconv1_bn"])
    wt1 = p["tconv1_w"]                                      # (8, 4, 2, 2)
    w1blk = np.zeros((32, 64), f32)
    bt1row = np.zeros((1, 64), f32)
    for w in range(4):
        for ky in range(2):
            for kx in range(2):
                for co in range(4):
                    col = w * 16 + (ky * 2 + kx) * 4 + co
                    bt1row[0, col] = bt1[co]
                    for ci in range(8):
                        w1blk[w * 8 + ci, col] = wt1[ci, co, ky, kx] * st1[co]
    c["w1blk"], c["bt1"] = w1blk, bt1row

    # ---------------- decoder tconv2 (4 -> 1, k=2, s=2) + interleave ---------
    wt2 = p["tconv2_w"]                                      # (4, 1, 2, 2)
    w2blk = np.zeros((64, 64), f32)
    for w in range(4):
        for ky in range(2):
            for kx in range(2):
                for ci in range(4):
                    for kyp in range(2):
                        for kxp in range(2):
                            rr_i = 2 * ky + kyp
                            cc_i = 2 * kx + kxp
                            w2blk[w * 16 + (ky * 2 + kx) * 4 + ci,
                                  w * 16 + rr_i * 4 + cc_i] = wt2[ci, 0, kyp, kxp]
    c["w2blk"] = w2blk
    c["bt2"] = np.full((1, 64), p["tconv2_b"][0], f32)

    ll = np.zeros((4, B * 16, B * 4), f32)
    rrm = np.zeros((4, 64, 16), f32)
    for rr_i in range(4):
        for b in range(B):
            for h in range(4):
                ll[rr_i, b * 16 + 4 * h + rr_i, b * 4 + h] = 1.0
        for w in range(4):
            for cc_i in range(4):
                rrm[rr_i, w * 16 + rr_i * 4 + cc_i, 4 * w + cc_i] = 1.0
    c["ll"], c["rr"] = ll, rrm

    # Real weights -> bf16 MXU operands; selection/shift mats & biases -> f32.
    bf16_keys = {"cw1", "cw2", "w0h", "w1e", "wl", "wd0", "wd1", "wd2h",
                 "w1blk", "w2blk"}
    out = {}
    for k, v in c.items():
        dt = jnp.bfloat16 if k in bf16_keys else jnp.float32
        out[k] = jnp.asarray(np.asarray(v, f32), dtype=dt)
    return out


# ----------------------------------------------------------------------------
if __name__ == "__main__":
    key = jax.random.PRNGKey(0)
    k_in, k_par = jax.random.split(key)

    B = 2
    x = jax.random.normal(k_in, (B, 1, *INPUT_SHAPE), jnp.float32)   # NCHW
    raw_params = init_params(k_par)
    consts = build_kernel_constants(raw_params, B)

    fwd = jax.jit(conv_ae_forward)
    out = fwd(x, consts)
    out = jax.block_until_ready(out)

    y = out["target"]
    assert y.shape == (B, 1, 16, 16), y.shape
    assert y.dtype == jnp.float32
    assert bool(jnp.all(jnp.isfinite(y)))
    assert bool(jnp.all((y >= 0.0) & (y <= 1.0)))    # sigmoid output range

    print("KERNEL_OK")
</pallas_src>

<mosaic_0001>
module attributes {stable_mosaic.version = 11 : i64} {
  func.func @_conv_ae_kernel(%arg0: i32, %arg1: memref<32x16xf32, #tpu.memory_space<vmem>>, %arg2: memref<3x16x64xbf16, #tpu.memory_space<vmem>>, %arg3: memref<2x32x32xf32, #tpu.memory_space<vmem>>, %arg4: memref<1x64xf32, #tpu.memory_space<vmem>>, %arg5: memref<2x16x32xf32, #tpu.memory_space<vmem>>, %arg6: memref<2x64x32xf32, #tpu.memory_space<vmem>>, %arg7: memref<3x32x64xbf16, #tpu.memory_space<vmem>>, %arg8: memref<2x16x16xf32, #tpu.memory_space<vmem>>, %arg9: memref<1x64xf32, #tpu.memory_space<vmem>>, %arg10: memref<2x8x16xf32, #tpu.memory_space<vmem>>, %arg11: memref<2x64x32xf32, #tpu.memory_space<vmem>>, %arg12: memref<4x2x8xf32, #tpu.memory_space<vmem>>, %arg13: memref<4x32x32xbf16, #tpu.memory_space<vmem>>, %arg14: memref<1x32xf32, #tpu.memory_space<vmem>>, %arg15: memref<32x16xbf16, #tpu.memory_space<vmem>>, %arg16: memref<1x16xf32, #tpu.memory_space<vmem>>, %arg17: memref<16x8xbf16, #tpu.memory_space<vmem>>, %arg18: memref<1x8xf32, #tpu.memory_space<vmem>>, %arg19: memref<8x16xbf16, #tpu.memory_space<vmem>>, %arg20: memref<1x16xf32, #tpu.memory_space<vmem>>, %arg21: memref<16x32xbf16, #tpu.memory_space<vmem>>, %arg22: memref<1x32xf32, #tpu.memory_space<vmem>>, %arg23: memref<4x8x2xf32, #tpu.memory_space<vmem>>, %arg24: memref<4x32x32xbf16, #tpu.memory_space<vmem>>, %arg25: memref<4x1x32xf32, #tpu.memory_space<vmem>>, %arg26: memref<32x64xbf16, #tpu.memory_space<vmem>>, %arg27: memref<1x64xf32, #tpu.memory_space<vmem>>, %arg28: memref<64x64xbf16, #tpu.memory_space<vmem>>, %arg29: memref<1x64xf32, #tpu.memory_space<vmem>>, %arg30: memref<4x32x8xf32, #tpu.memory_space<vmem>>, %arg31: memref<4x64x16xf32, #tpu.memory_space<vmem>>, %arg32: memref<32x16xf32, #tpu.memory_space<vmem>>) attributes {dimension_semantics = [#tpu.dimension_semantics<arbitrary>], iteration_bounds = array<i64: 1>, scalar_prefetch = 0 : i64, scratch_operands = 0 : i64, tpu.core_type = #tpu.core_type<tc>, window_params = [{pipeline_mode = #tpu.pipeline_mode<synchronous>, transform_indices = @transform_0, window_bounds = array<i64: 32, 16>}, {pipeline_mode = #tpu.pipeline_mode<synchronous>, transform_indices = @transform_1, window_bounds = array<i64: 3, 16, 64>}, {pipeline_mode = #tpu.pipeline_mode<synchronous>, transform_indices = @transform_2, window_bounds = array<i64: 2, 32, 32>}, {pipeline_mode = #tpu.pipeline_mode<synchronous>, transform_indices = @transform_3, window_bounds = array<i64: 1, 64>}, {pipeline_mode = #tpu.pipeline_mode<synchronous>, transform_indices = @transform_4, window_bounds = array<i64: 2, 16, 32>}, {pipeline_mode = #tpu.pipeline_mode<synchronous>, transform_indices = @transform_5, window_bounds = array<i64: 2, 64, 32>}, {pipeline_mode = #tpu.pipeline_mode<synchronous>, transform_indices = @transform_6, window_bounds = array<i64: 3, 32, 64>}, {pipeline_mode = #tpu.pipeline_mode<synchronous>, transform_indices = @transform_7, window_bounds = array<i64: 2, 16, 16>}, {pipeline_mode = #tpu.pipeline_mode<synchronous>, transform_indices = @transform_8, window_bounds = array<i64: 1, 64>}, {pipeline_mode = #tpu.pipeline_mode<synchronous>, transform_indices = @transform_9, window_bounds = array<i64: 2, 8, 16>}, {pipeline_mode = #tpu.pipeline_mode<synchronous>, transform_indices = @transform_10, window_bounds = array<i64: 2, 64, 32>}, {pipeline_mode = #tpu.pipeline_mode<synchronous>, transform_indices = @transform_11, window_bounds = array<i64: 4, 2, 8>}, {pipeline_mode = #tpu.pipeline_mode<synchronous>, transform_indices = @transform_12, window_bounds = array<i64: 4, 32, 32>}, {pipeline_mode = #tpu.pipeline_mode<synchronous>, transform_indices = @transform_13, window_bounds = array<i64: 1, 32>}, {pipeline_mode = #tpu.pipeline_mode<synchronous>, transform_indices = @transform_14, window_bounds = array<i64: 32, 16>}, {pipeline_mode = #tpu.pipeline_mode<synchronous>, transform_indices = @transform_15, window_bounds = array<i64: 1, 16>}, {pipeline_mode = #tpu.pipeline_mode<synchronous>, transform_indices = @transform_16, window_bounds = array<i64: 16, 8>}, {pipeline_mode = #tpu.pipeline_mode<synchronous>, transform_indices = @transform_17, window_bounds = array<i64: 1, 8>}, {pipeline_mode = #tpu.pipeline_mode<synchronous>, transform_indices = @transform_18, window_bounds = array<i64: 8, 16>}, {pipeline_mode = #tpu.pipeline_mode<synchronous>, transform_indices = @transform_19, window_bounds = array<i64: 1, 16>}, {pipeline_mode = #tpu.pipeline_mode<synchronous>, transform_indices = @transform_20, window_bounds = array<i64: 16, 32>}, {pipeline_mode = #tpu.pipeline_mode<synchronous>, transform_indices = @transform_21, window_bounds = array<i64: 1, 32>}, {pipeline_mode = #tpu.pipeline_mode<synchronous>, transform_indices = @transform_22, window_bounds = array<i64: 4, 8, 2>}, {pipeline_mode = #tpu.pipeline_mode<synchronous>, transform_indices = @transform_23, window_bounds = array<i64: 4, 32, 32>}, {pipeline_mode = #tpu.pipeline_mode<synchronous>, transform_indices = @transform_24, window_bounds = array<i64: 4, 1, 32>}, {pipeline_mode = #tpu.pipeline_mode<synchronous>, transform_indices = @transform_25, window_bounds = array<i64: 32, 64>}, {pipeline_mode = #tpu.pipeline_mode<synchronous>, transform_indices = @transform_26, window_bounds = array<i64: 1, 64>}, {pipeline_mode = #tpu.pipeline_mode<synchronous>, transform_indices = @transform_27, window_bounds = array<i64: 64, 64>}, {pipeline_mode = #tpu.pipeline_mode<synchronous>, transform_indices = @transform_28, window_bounds = array<i64: 1, 64>}, {pipeline_mode = #tpu.pipeline_mode<synchronous>, transform_indices = @transform_29, window_bounds = array<i64: 4, 32, 8>}, {pipeline_mode = #tpu.pipeline_mode<synchronous>, transform_indices = @transform_30, window_bounds = array<i64: 4, 64, 16>}, {pipeline_mode = #tpu.pipeline_mode<synchronous>, transform_indices = @transform_31, window_bounds = array<i64: 32, 16>}]} {
    %c0 = arith.constant 0 : index
    %c0_0 = arith.constant 0 : index
    %0 = vector.load %arg1[%c0, %c0_0] : memref<32x16xf32, #tpu.memory_space<vmem>>, vector<32x16xf32>
    %c0_1 = arith.constant 0 : index
    %c0_2 = arith.constant 0 : index
    %c0_3 = arith.constant 0 : index
    %1 = vector.load %arg3[%c0_1, %c0_2, %c0_3] : memref<2x32x32xf32, #tpu.memory_space<vmem>>, vector<1x32x32xf32>
    %2 = vector.shape_cast %1 : vector<1x32x32xf32> to vector<32x32xf32>
    %cst = arith.constant dense<0.000000e+00> : vector<32x16xf32>
    %3 = tpu.matmul %2, %0, %cst {dimension_numbers = #tpu.dot_dimension_numbers<[1], [0], [0], [1], [0, 0, 1, 1], [], []>} : vector<32x32xf32>, vector<32x16xf32>, vector<32x16xf32> -> vector<32x16xf32>
    %c0_4 = arith.constant 0 : index
    %c0_5 = arith.constant 0 : index
    %c0_6 = arith.constant 0 : index
    %4 = vector.load %arg2[%c0_4, %c0_5, %c0_6] : memref<3x16x64xbf16, #tpu.memory_space<vmem>>, vector<1x16x64xbf16>
    %5 = vector.shape_cast %4 : vector<1x16x64xbf16> to vector<16x64xbf16>
    %6 = arith.truncf %3 : vector<32x16xf32> to vector<32x16xbf16>
    %cst_7 = arith.constant dense<0.000000e+00> : vector<32x64xf32>
    %7 = tpu.matmul %6, %5, %cst_7 {dimension_numbers = #tpu.dot_dimension_numbers<[1], [0], [0], [1], [0, 0, 1, 1], [], []>} : vector<32x16xbf16>, vector<16x64xbf16>, vector<32x64xf32> -> vector<32x64xf32>
    %c1 = arith.constant 1 : index
    %c0_8 = arith.constant 0 : index
    %c0_9 = arith.constant 0 : index
    %8 = vector.load %arg2[%c1, %c0_8, %c0_9] : memref<3x16x64xbf16, #tpu.memory_space<vmem>>, vector<1x16x64xbf16>
    %9 = vector.shape_cast %8 : vector<1x16x64xbf16> to vector<16x64xbf16>
    %10 = arith.truncf %0 : vector<32x16xf32> to vector<32x16xbf16>
    %cst_10 = arith.constant dense<0.000000e+00> : vector<32x64xf32>
    %11 = tpu.matmul %10, %9, %cst_10 {dimension_numbers = #tpu.dot_dimension_numbers<[1], [0], [0], [1], [0, 0, 1, 1], [], []>} : vector<32x16xbf16>, vector<16x64xbf16>, vector<32x64xf32> -> vector<32x64xf32>
    %12 = arith.addf %7, %11 : vector<32x64xf32>
    %c1_11 = arith.constant 1 : index
    %c0_12 = arith.constant 0 : index
    %c0_13 = arith.constant 0 : index
    %13 = vector.load %arg3[%c1_11, %c0_12, %c0_13] : memref<2x32x32xf32, #tpu.memory_space<vmem>>, vector<1x32x32xf32>
    %14 = vector.shape_cast %13 : vector<1x32x32xf32> to vector<32x32xf32>
    %cst_14 = arith.constant dense<0.000000e+00> : vector<32x16xf32>
    %15 = tpu.matmul %14, %0, %cst_14 {dimension_numbers = #tpu.dot_dimension_numbers<[1], [0], [0], [1], [0, 0, 1, 1], [], []>} : vector<32x32xf32>, vector<32x16xf32>, vector<32x16xf32> -> vector<32x16xf32>
    %c2 = arith.constant 2 : index
    %c0_15 = arith.constant 0 : index
    %c0_16 = arith.constant 0 : index
    %16 = vector.load %arg2[%c2, %c0_15, %c0_16] : memref<3x16x64xbf16, #tpu.memory_space<vmem>>, vector<1x16x64xbf16>
    %17 = vector.shape_cast %16 : vector<1x16x64xbf16> to vector<16x64xbf16>
    %18 = arith.truncf %15 : vector<32x16xf32> to vector<32x16xbf16>
    %cst_17 = arith.constant dense<0.000000e+00> : vector<32x64xf32>
    %19 = tpu.matmul %18, %17, %cst_17 {dimension_numbers = #tpu.dot_dimension_numbers<[1], [0], [0], [1], [0, 0, 1, 1], [], []>} : vector<32x16xbf16>, vector<16x64xbf16>, vector<32x64xf32> -> vector<32x64xf32>
    %20 = arith.addf %12, %19 : vector<32x64xf32>
    %c0_18 = arith.constant 0 : index
    %c0_19 = arith.constant 0 : index
    %21 = vector.load %arg4[%c0_18, %c0_19] : memref<1x64xf32, #tpu.memory_space<vmem>>, vector<1x64xf32>
    %22 = vector.broadcast %21 : vector<1x64xf32> to vector<32x64xf32>
    %23 = arith.addf %20, %22 : vector<32x64xf32>
    %cst_20 = arith.constant 0.000000e+00 : f32
    %24 = vector.broadcast %cst_20 : f32 to vector<32x64xf32>
    %25 = arith.maximumf %23, %24 : vector<32x64xf32>
    %c0_21 = arith.constant 0 : index
    %c0_22 = arith.constant 0 : index
    %c0_23 = arith.constant 0 : index
    %26 = vector.load %arg5[%c0_21, %c0_22, %c0_23] : memref<2x16x32xf32, #tpu.memory_space<vmem>>, vector<1x16x32xf32>
    %27 = vector.shape_cast %26 : vector<1x16x32xf32> to vector<16x32xf32>
    %cst_24 = arith.constant dense<0.000000e+00> : vector<16x64xf32>
    %28 = tpu.matmul %27, %25, %cst_24 {dimension_numbers = #tpu.dot_dimension_numbers<[1], [0], [0], [1], [0, 0, 1, 1], [], []>} : vector<16x32xf32>, vector<32x64xf32>, vector<16x64xf32> -> vector<16x64xf32>
    %c1_25 = arith.constant 1 : index
    %c0_26 = arith.constant 0 : index
    %c0_27 = arith.constant 0 : index
    %29 = vector.load %arg5[%c1_25, %c0_26, %c0_27] : memref<2x16x32xf32, #tpu.memory_space<vmem>>, vector<1x16x32xf32>
    %30 = vector.shape_cast %29 : vector<1x16x32xf32> to vector<16x32xf32>
    %cst_28 = arith.constant dense<0.000000e+00> : vector<16x64xf32>
    %31 = tpu.matmul %30, %25, %cst_28 {dimension_numbers = #tpu.dot_dimension_numbers<[1], [0], [0], [1], [0, 0, 1, 1], [], []>} : vector<16x32xf32>, vector<32x64xf32>, vector<16x64xf32> -> vector<16x64xf32>
    %32 = arith.maximumf %28, %31 : vector<16x64xf32>
    %c0_29 = arith.constant 0 : index
    %c0_30 = arith.constant 0 : index
    %c0_31 = arith.constant 0 : index
    %33 = vector.load %arg6[%c0_29, %c0_30, %c0_31] : memref<2x64x32xf32, #tpu.memory_space<vmem>>, vector<1x64x32xf32>
    %34 = vector.shape_cast %33 : vector<1x64x32xf32> to vector<64x32xf32>
    %cst_32 = arith.constant dense<0.000000e+00> : vector<16x32xf32>
    %35 = tpu.matmul %32, %34, %cst_32 {dimension_numbers = #tpu.dot_dimension_numbers<[1], [0], [0], [1], [0, 0, 1, 1], [], []>} : vector<16x64xf32>, vector<64x32xf32>, vector<16x32xf32> -> vector<16x32xf32>
    %c1_33 = arith.constant 1 : index
    %c0_34 = arith.constant 0 : index
    %c0_35 = arith.constant 0 : index
    %36 = vector.load %arg6[%c1_33, %c0_34, %c0_35] : memref<2x64x32xf32, #tpu.memory_space<vmem>>, vector<1x64x32xf32>
    %37 = vector.shape_cast %36 : vector<1x64x32xf32> to vector<64x32xf32>
    %cst_36 = arith.constant dense<0.000000e+00> : vector<16x32xf32>
    %38 = tpu.matmul %32, %37, %cst_36 {dimension_numbers = #tpu.dot_dimension_numbers<[1], [0], [0], [1], [0, 0, 1, 1], [], []>} : vector<16x64xf32>, vector<64x32xf32>, vector<16x32xf32> -> vector<16x32xf32>
    %39 = arith.maximumf %35, %38 : vector<16x32xf32>
    %c0_37 = arith.constant 0 : index
    %c0_38 = arith.constant 0 : index
    %c0_39 = arith.constant 0 : index
    %40 = vector.load %arg8[%c0_37, %c0_38, %c0_39] : memref<2x16x16xf32, #tpu.memory_space<vmem>>, vector<1x16x16xf32>
    %41 = vector.shape_cast %40 : vector<1x16x16xf32> to vector<16x16xf32>
    %cst_40 = arith.constant dense<0.000000e+00> : vector<16x32xf32>
    %42 = tpu.matmul %41, %39, %cst_40 {dimension_numbers = #tpu.dot_dimension_numbers<[1], [0], [0], [1], [0, 0, 1, 1], [], []>} : vector<16x16xf32>, vector<16x32xf32>, vector<16x32xf32> -> vector<16x32xf32>
    %c0_41 = arith.constant 0 : index
    %c0_42 = arith.constant 0 : index
    %c0_43 = arith.constant 0 : index
    %43 = vector.load %arg7[%c0_41, %c0_42, %c0_43] : memref<3x32x64xbf16, #tpu.memory_space<vmem>>, vector<1x32x64xbf16>
    %44 = vector.shape_cast %43 : vector<1x32x64xbf16> to vector<32x64xbf16>
    %45 = arith.truncf %42 : vector<16x32xf32> to vector<16x32xbf16>
    %cst_44 = arith.constant dense<0.000000e+00> : vector<16x64xf32>
    %46 = tpu.matmul %45, %44, %cst_44 {dimension_numbers = #tpu.dot_dimension_numbers<[1], [0], [0], [1], [0, 0, 1, 1], [], []>} : vector<16x32xbf16>, vector<32x64xbf16>, vector<16x64xf32> -> vector<16x64xf32>
    %c1_45 = arith.constant 1 : index
    %c0_46 = arith.constant 0 : index
    %c0_47 = arith.constant 0 : index
    %47 = vector.load %arg7[%c1_45, %c0_46, %c0_47] : memref<3x32x64xbf16, #tpu.memory_space<vmem>>, vector<1x32x64xbf16>
    %48 = vector.shape_cast %47 : vector<1x32x64xbf16> to vector<32x64xbf16>
    %49 = arith.truncf %39 : vector<16x32xf32> to vector<16x32xbf16>
    %cst_48 = arith.constant dense<0.000000e+00> : vector<16x64xf32>
    %50 = tpu.matmul %49, %48, %cst_48 {dimension_numbers = #tpu.dot_dimension_numbers<[1], [0], [0], [1], [0, 0, 1, 1], [], []>} : vector<16x32xbf16>, vector<32x64xbf16>, vector<16x64xf32> -> vector<16x64xf32>
    %51 = arith.addf %46, %50 : vector<16x64xf32>
    %c1_49 = arith.constant 1 : index
    %c0_50 = arith.constant 0 : index
    %c0_51 = arith.constant 0 : index
    %52 = vector.load %arg8[%c1_49, %c0_50, %c0_51] : memref<2x16x16xf32, #tpu.memory_space<vmem>>, vector<1x16x16xf32>
    %53 = vector.shape_cast %52 : vector<1x16x16xf32> to vector<16x16xf32>
    %cst_52 = arith.constant dense<0.000000e+00> : vector<16x32xf32>
    %54 = tpu.matmul %53, %39, %cst_52 {dimension_numbers = #tpu.dot_dimension_numbers<[1], [0], [0], [1], [0, 0, 1, 1], [], []>} : vector<16x16xf32>, vector<16x32xf32>, vector<16x32xf32> -> vector<16x32xf32>
    %c2_53 = arith.constant 2 : index
    %c0_54 = arith.constant 0 : index
    %c0_55 = arith.constant 0 : index
    %55 = vector.load %arg7[%c2_53, %c0_54, %c0_55] : memref<3x32x64xbf16, #tpu.memory_space<vmem>>, vector<1x32x64xbf16>
    %56 = vector.shape_cast %55 : vector<1x32x64xbf16> to vector<32x64xbf16>
    %57 = arith.truncf %54 : vector<16x32xf32> to vector<16x32xbf16>
    %cst_56 = arith.constant dense<0.000000e+00> : vector<16x64xf32>
    %58 = tpu.matmul %57, %56, %cst_56 {dimension_numbers = #tpu.dot_dimension_numbers<[1], [0], [0], [1], [0, 0, 1, 1], [], []>} : vector<16x32xbf16>, vector<32x64xbf16>, vector<16x64xf32> -> vector<16x64xf32>
    %59 = arith.addf %51, %58 : vector<16x64xf32>
    %c0_57 = arith.constant 0 : index
    %c0_58 = arith.constant 0 : index
    %60 = vector.load %arg9[%c0_57, %c0_58] : memref<1x64xf32, #tpu.memory_space<vmem>>, vector<1x64xf32>
    %61 = vector.broadcast %60 : vector<1x64xf32> to vector<16x64xf32>
    %62 = arith.addf %59, %61 : vector<16x64xf32>
    %cst_59 = arith.constant 0.000000e+00 : f32
    %63 = vector.broadcast %cst_59 : f32 to vector<16x64xf32>
    %64 = arith.maximumf %62, %63 : vector<16x64xf32>
    %c0_60 = arith.constant 0 : index
    %c0_61 = arith.constant 0 : index
    %c0_62 = arith.constant 0 : index
    %65 = vector.load %arg10[%c0_60, %c0_61, %c0_62] : memref<2x8x16xf32, #tpu.memory_space<vmem>>, vector<1x8x16xf32>
    %66 = vector.shape_cast %65 : vector<1x8x16xf32> to vector<8x16xf32>
    %cst_63 = arith.constant dense<0.000000e+00> : vector<8x64xf32>
    %67 = tpu.matmul %66, %64, %cst_63 {dimension_numbers = #tpu.dot_dimension_numbers<[1], [0], [0], [1], [0, 0, 1, 1], [], []>} : vector<8x16xf32>, vector<16x64xf32>, vector<8x64xf32> -> vector<8x64xf32>
    %c1_64 = arith.constant 1 : index
    %c0_65 = arith.constant 0 : index
    %c0_66 = arith.constant 0 : index
    %68 = vector.load %arg10[%c1_64, %c0_65, %c0_66] : memref<2x8x16xf32, #tpu.memory_space<vmem>>, vector<1x8x16xf32>
    %69 = vector.shape_cast %68 : vector<1x8x16xf32> to vector<8x16xf32>
    %cst_67 = arith.constant dense<0.000000e+00> : vector<8x64xf32>
    %70 = tpu.matmul %69, %64, %cst_67 {dimension_numbers = #tpu.dot_dimension_numbers<[1], [0], [0], [1], [0, 0, 1, 1], [], []>} : vector<8x16xf32>, vector<16x64xf32>, vector<8x64xf32> -> vector<8x64xf32>
    %71 = arith.maximumf %67, %70 : vector<8x64xf32>
    %c0_68 = arith.constant 0 : index
    %c0_69 = arith.constant 0 : index
    %c0_70 = arith.constant 0 : index
    %72 = vector.load %arg11[%c0_68, %c0_69, %c0_70] : memref<2x64x32xf32, #tpu.memory_space<vmem>>, vector<1x64x32xf32>
    %73 = vector.shape_cast %72 : vector<1x64x32xf32> to vector<64x32xf32>
    %cst_71 = arith.constant dense<0.000000e+00> : vector<8x32xf32>
    %74 = tpu.matmul %71, %73, %cst_71 {dimension_numbers = #tpu.dot_dimension_numbers<[1], [0], [0], [1], [0, 0, 1, 1], [], []>} : vector<8x64xf32>, vector<64x32xf32>, vector<8x32xf32> -> vector<8x32xf32>
    %c1_72 = arith.constant 1 : index
    %c0_73 = arith.constant 0 : index
    %c0_74 = arith.constant 0 : index
    %75 = vector.load %arg11[%c1_72, %c0_73, %c0_74] : memref<2x64x32xf32, #tpu.memory_space<vmem>>, vector<1x64x32xf32>
    %76 = vector.shape_cast %75 : vector<1x64x32xf32> to vector<64x32xf32>
    %cst_75 = arith.constant dense<0.000000e+00> : vector<8x32xf32>
    %77 = tpu.matmul %71, %76, %cst_75 {dimension_numbers = #tpu.dot_dimension_numbers<[1], [0], [0], [1], [0, 0, 1, 1], [], []>} : vector<8x64xf32>, vector<64x32xf32>, vector<8x32xf32> -> vector<8x32xf32>
    %78 = arith.maximumf %74, %77 : vector<8x32xf32>
    %c0_76 = arith.constant 0 : index
    %c0_77 = arith.constant 0 : index
    %c0_78 = arith.constant 0 : index
    %79 = vector.load %arg12[%c0_76, %c0_77, %c0_78] : memref<4x2x8xf32, #tpu.memory_space<vmem>>, vector<1x2x8xf32>
    %80 = vector.shape_cast %79 : vector<1x2x8xf32> to vector<2x8xf32>
    %cst_79 = arith.constant dense<0.000000e+00> : vector<2x32xf32>
    %81 = tpu.matmul %80, %78, %cst_79 {dimension_numbers = #tpu.dot_dimension_numbers<[1], [0], [0], [1], [0, 0, 1, 1], [], []>} : vector<2x8xf32>, vector<8x32xf32>, vector<2x32xf32> -> vector<2x32xf32>
    %c0_80 = arith.constant 0 : index
    %c0_81 = arith.constant 0 : index
    %c0_82 = arith.constant 0 : index
    %82 = vector.load %arg13[%c0_80, %c0_81, %c0_82] : memref<4x32x32xbf16, #tpu.memory_space<vmem>>, vector<1x32x32xbf16>
    %83 = vector.shape_cast %82 : vector<1x32x32xbf16> to vector<32x32xbf16>
    %84 = arith.truncf %81 : vector<2x32xf32> to vector<2x32xbf16>
    %cst_83 = arith.constant dense<0.000000e+00> : vector<2x32xf32>
    %85 = tpu.matmul %84, %83, %cst_83 {dimension_numbers = #tpu.dot_dimension_numbers<[1], [0], [0], [1], [0, 0, 1, 1], [], []>} : vector<2x32xbf16>, vector<32x32xbf16>, vector<2x32xf32> -> vector<2x32xf32>
    %c1_84 = arith.constant 1 : index
    %c0_85 = arith.constant 0 : index
    %c0_86 = arith.constant 0 : index
    %86 = vector.load %arg12[%c1_84, %c0_85, %c0_86] : memref<4x2x8xf32, #tpu.memory_space<vmem>>, vector<1x2x8xf32>
    %87 = vector.shape_cast %86 : vector<1x2x8xf32> to vector<2x8xf32>
    %cst_87 = arith.constant dense<0.000000e+00> : vector<2x32xf32>
    %88 = tpu.matmul %87, %78, %cst_87 {dimension_numbers = #tpu.dot_dimension_numbers<[1], [0], [0], [1], [0, 0, 1, 1], [], []>} : vector<2x8xf32>, vector<8x32xf32>, vector<2x32xf32> -> vector<2x32xf32>
    %c1_88 = arith.constant 1 : index
    %c0_89 = arith.constant 0 : index
    %c0_90 = arith.constant 0 : index
    %89 = vector.load %arg13[%c1_88, %c0_89, %c0_90] : memref<4x32x32xbf16, #tpu.memory_space<vmem>>, vector<1x32x32xbf16>
    %90 = vector.shape_cast %89 : vector<1x32x32xbf16> to vector<32x32xbf16>
    %91 = arith.truncf %88 : vector<2x32xf32> to vector<2x32xbf16>
    %cst_91 = arith.constant dense<0.000000e+00> : vector<2x32xf32>
    %92 = tpu.matmul %91, %90, %cst_91 {dimension_numbers = #tpu.dot_dimension_numbers<[1], [0], [0], [1], [0, 0, 1, 1], [], []>} : vector<2x32xbf16>, vector<32x32xbf16>, vector<2x32xf32> -> vector<2x32xf32>
    %93 = arith.addf %85, %92 : vector<2x32xf32>
    %c2_92 = arith.constant 2 : index
    %c0_93 = arith.constant 0 : index
    %c0_94 = arith.constant 0 : index
    %94 = vector.load %arg12[%c2_92, %c0_93, %c0_94] : memref<4x2x8xf32, #tpu.memory_space<vmem>>, vector<1x2x8xf32>
    %95 = vector.shape_cast %94 : vector<1x2x8xf32> to vector<2x8xf32>
    %cst_95 = arith.constant dense<0.000000e+00> : vector<2x32xf32>
    %96 = tpu.matmul %95, %78, %cst_95 {dimension_numbers = #tpu.dot_dimension_numbers<[1], [0], [0], [1], [0, 0, 1, 1], [], []>} : vector<2x8xf32>, vector<8x32xf32>, vector<2x32xf32> -> vector<2x32xf32>
    %c2_96 = arith.constant 2 : index
    %c0_97 = arith.constant 0 : index
    %c0_98 = arith.constant 0 : index
    %97 = vector.load %arg13[%c2_96, %c0_97, %c0_98] : memref<4x32x32xbf16, #tpu.memory_space<vmem>>, vector<1x32x32xbf16>
    %98 = vector.shape_cast %97 : vector<1x32x32xbf16> to vector<32x32xbf16>
    %99 = arith.truncf %96 : vector<2x32xf32> to vector<2x32xbf16>
    %cst_99 = arith.constant dense<0.000000e+00> : vector<2x32xf32>
    %100 = tpu.matmul %99, %98, %cst_99 {dimension_numbers = #tpu.dot_dimension_numbers<[1], [0], [0], [1], [0, 0, 1, 1], [], []>} : vector<2x32xbf16>, vector<32x32xbf16>, vector<2x32xf32> -> vector<2x32xf32>
    %101 = arith.addf %93, %100 : vector<2x32xf32>
    %c3 = arith.constant 3 : index
    %c0_100 = arith.constant 0 : index
    %c0_101 = arith.constant 0 : index
    %102 = vector.load %arg12[%c3, %c0_100, %c0_101] : memref<4x2x8xf32, #tpu.memory_space<vmem>>, vector<1x2x8xf32>
    %103 = vector.shape_cast %102 : vector<1x2x8xf32> to vector<2x8xf32>
    %cst_102 = arith.constant dense<0.000000e+00> : vector<2x32xf32>
    %104 = tpu.matmul %103, %78, %cst_102 {dimension_numbers = #tpu.dot_dimension_numbers<[1], [0], [0], [1], [0, 0, 1, 1], [], []>} : vector<2x8xf32>, vector<8x32xf32>, vector<2x32xf32> -> vector<2x32xf32>
    %c3_103 = arith.constant 3 : index
    %c0_104 = arith.constant 0 : index
    %c0_105 = arith.constant 0 : index
    %105 = vector.load %arg13[%c3_103, %c0_104, %c0_105] : memref<4x32x32xbf16, #tpu.memory_space<vmem>>, vector<1x32x32xbf16>
    %106 = vector.shape_cast %105 : vector<1x32x32xbf16> to vector<32x32xbf16>
    %107 = arith.truncf %104 : vector<2x32xf32> to vector<2x32xbf16>
    %cst_106 = arith.constant dense<0.000000e+00> : vector<2x32xf32>
    %108 = tpu.matmul %107, %106, %cst_106 {dimension_numbers = #tpu.dot_dimension_numbers<[1], [0], [0], [1], [0, 0, 1, 1], [], []>} : vector<2x32xbf16>, vector<32x32xbf16>, vector<2x32xf32> -> vector<2x32xf32>
    %109 = arith.addf %101, %108 : vector<2x32xf32>
    %c0_107 = arith.constant 0 : index
    %c0_108 = arith.constant 0 : index
    %110 = vector.load %arg14[%c0_107, %c0_108] : memref<1x32xf32, #tpu.memory_space<vmem>>, vector<1x32xf32>
    %111 = vector.broadcast %110 : vector<1x32xf32> to vector<2x32xf32>
    %112 = arith.addf %109, %111 : vector<2x32xf32>
    %cst_109 = arith.constant 0.000000e+00 : f32
    %113 = vector.broadcast %cst_109 : f32 to vector<2x32xf32>
    %114 = arith.maximumf %112, %113 : vector<2x32xf32>
    %c0_110 = arith.constant 0 : index
    %c0_111 = arith.constant 0 : index
    %115 = vector.load %arg15[%c0_110, %c0_111] : memref<32x16xbf16, #tpu.memory_space<vmem>>, vector<32x16xbf16>
    %116 = arith.truncf %114 : vector<2x32xf32> to vector<2x32xbf16>
    %cst_112 = arith.constant dense<0.000000e+00> : vector<2x16xf32>
    %117 = tpu.matmul %116, %115, %cst_112 {dimension_numbers = #tpu.dot_dimension_numbers<[1], [0], [0], [1], [0, 0, 1, 1], [], []>} : vector<2x32xbf16>, vector<32x16xbf16>, vector<2x16xf32> -> vector<2x16xf32>
    %c0_113 = arith.constant 0 : index
    %c0_114 = arith.constant 0 : index
    %118 = vector.load %arg16[%c0_113, %c0_114] : memref<1x16xf32, #tpu.memory_space<vmem>>, vector<1x16xf32>
    %119 = vector.broadcast %118 : vector<1x16xf32> to vector<2x16xf32>
    %120 = arith.addf %117, %119 : vector<2x16xf32>
    %cst_115 = arith.constant 0.000000e+00 : f32
    %121 = vector.broadcast %cst_115 : f32 to vector<2x16xf32>
    %122 = arith.maximumf %120, %121 : vector<2x16xf32>
    %c0_116 = arith.constant 0 : index
    %c0_117 = arith.constant 0 : index
    %123 = vector.load %arg17[%c0_116, %c0_117] : memref<16x8xbf16, #tpu.memory_space<vmem>>, vector<16x8xbf16>
    %124 = arith.truncf %122 : vector<2x16xf32> to vector<2x16xbf16>
    %cst_118 = arith.constant dense<0.000000e+00> : vector<2x8xf32>
    %125 = tpu.matmul %124, %123, %cst_118 {dimension_numbers = #tpu.dot_dimension_numbers<[1], [0], [0], [1], [0, 0, 1, 1], [], []>} : vector<2x16xbf16>, vector<16x8xbf16>, vector<2x8xf32> -> vector<2x8xf32>
    %c0_119 = arith.constant 0 : index
    %c0_120 = arith.constant 0 : index
    %126 = vector.load %arg18[%c0_119, %c0_120] : memref<1x8xf32, #tpu.memory_space<vmem>>, vector<1x8xf32>
    %127 = vector.broadcast %126 : vector<1x8xf32> to vector<2x8xf32>
    %128 = arith.addf %125, %127 : vector<2x8xf32>
    %cst_121 = arith.constant 0.000000e+00 : f32
    %129 = vector.broadcast %cst_121 : f32 to vector<2x8xf32>
    %130 = arith.maximumf %128, %129 : vector<2x8xf32>
    %c0_122 = arith.constant 0 : index
    %c0_123 = arith.constant 0 : index
    %131 = vector.load %arg19[%c0_122, %c0_123] : memref<8x16xbf16, #tpu.memory_space<vmem>>, vector<8x16xbf16>
    %132 = arith.truncf %130 : vector<2x8xf32> to vector<2x8xbf16>
    %cst_124 = arith.constant dense<0.000000e+00> : vector<2x16xf32>
    %133 = tpu.matmul %132, %131, %cst_124 {dimension_numbers = #tpu.dot_dimension_numbers<[1], [0], [0], [1], [0, 0, 1, 1], [], []>} : vector<2x8xbf16>, vector<8x16xbf16>, vector<2x16xf32> -> vector<2x16xf32>
    %c0_125 = arith.constant 0 : index
    %c0_126 = arith.constant 0 : index
    %134 = vector.load %arg20[%c0_125, %c0_126] : memref<1x16xf32, #tpu.memory_space<vmem>>, vector<1x16xf32>
    %135 = vector.broadcast %134 : vector<1x16xf32> to vector<2x16xf32>
    %136 = arith.addf %133, %135 : vector<2x16xf32>
    %cst_127 = arith.constant 0.000000e+00 : f32
    %137 = vector.broadcast %cst_127 : f32 to vector<2x16xf32>
    %138 = arith.maximumf %136, %137 : vector<2x16xf32>
    %c0_128 = arith.constant 0 : index
    %c0_129 = arith.constant 0 : index
    %139 = vector.load %arg21[%c0_128, %c0_129] : memref<16x32xbf16, #tpu.memory_space<vmem>>, vector<16x32xbf16>
    %140 = arith.truncf %138 : vector<2x16xf32> to vector<2x16xbf16>
    %cst_130 = arith.constant dense<0.000000e+00> : vector<2x32xf32>
    %141 = tpu.matmul %140, %139, %cst_130 {dimension_numbers = #tpu.dot_dimension_numbers<[1], [0], [0], [1], [0, 0, 1, 1], [], []>} : vector<2x16xbf16>, vector<16x32xbf16>, vector<2x32xf32> -> vector<2x32xf32>
    %c0_131 = arith.constant 0 : index
    %c0_132 = arith.constant 0 : index
    %142 = vector.load %arg22[%c0_131, %c0_132] : memref<1x32xf32, #tpu.memory_space<vmem>>, vector<1x32xf32>
    %143 = vector.broadcast %142 : vector<1x32xf32> to vector<2x32xf32>
    %144 = arith.addf %141, %143 : vector<2x32xf32>
    %cst_133 = arith.constant 0.000000e+00 : f32
    %145 = vector.broadcast %cst_133 : f32 to vector<2x32xf32>
    %146 = arith.maximumf %144, %145 : vector<2x32xf32>
    %c0_134 = arith.constant 0 : index
    %c0_135 = arith.constant 0 : index
    %c0_136 = arith.constant 0 : index
    %147 = vector.load %arg23[%c0_134, %c0_135, %c0_136] : memref<4x8x2xf32, #tpu.memory_space<vmem>>, vector<1x8x2xf32>
    %148 = vector.shape_cast %147 : vector<1x8x2xf32> to vector<8x2xf32>
    %c0_137 = arith.constant 0 : index
    %c0_138 = arith.constant 0 : index
    %c0_139 = arith.constant 0 : index
    %149 = vector.load %arg24[%c0_137, %c0_138, %c0_139] : memref<4x32x32xbf16, #tpu.memory_space<vmem>>, vector<1x32x32xbf16>
    %150 = vector.shape_cast %149 : vector<1x32x32xbf16> to vector<32x32xbf16>
    %151 = arith.truncf %146 : vector<2x32xf32> to vector<2x32xbf16>
    %cst_140 = arith.constant dense<0.000000e+00> : vector<2x32xf32>
    %152 = tpu.matmul %151, %150, %cst_140 {dimension_numbers = #tpu.dot_dimension_numbers<[1], [0], [0], [1], [0, 0, 1, 1], [], []>} : vector<2x32xbf16>, vector<32x32xbf16>, vector<2x32xf32> -> vector<2x32xf32>
    %c0_141 = arith.constant 0 : index
    %c0_142 = arith.constant 0 : index
    %c0_143 = arith.constant 0 : index
    %153 = vector.load %arg25[%c0_141, %c0_142, %c0_143] : memref<4x1x32xf32, #tpu.memory_space<vmem>>, vector<1x1x32xf32>
    %154 = vector.shape_cast %153 : vector<1x1x32xf32> to vector<1x32xf32>
    %155 = vector.broadcast %154 : vector<1x32xf32> to vector<2x32xf32>
    %156 = arith.addf %152, %155 : vector<2x32xf32>
    %cst_144 = arith.constant 0.000000e+00 : f32
    %157 = vector.broadcast %cst_144 : f32 to vector<2x32xf32>
    %158 = arith.maximumf %156, %157 : vector<2x32xf32>
    %cst_145 = arith.constant dense<0.000000e+00> : vector<8x32xf32>
    %159 = tpu.matmul %148, %158, %cst_145 {dimension_numbers = #tpu.dot_dimension_numbers<[1], [0], [0], [1], [0, 0, 1, 1], [], []>} : vector<8x2xf32>, vector<2x32xf32>, vector<8x32xf32> -> vector<8x32xf32>
    %c1_146 = arith.constant 1 : index
    %c0_147 = arith.constant 0 : index
    %c0_148 = arith.constant 0 : index
    %160 = vector.load %arg23[%c1_146, %c0_147, %c0_148] : memref<4x8x2xf32, #tpu.memory_space<vmem>>, vector<1x8x2xf32>
    %161 = vector.shape_cast %160 : vector<1x8x2xf32> to vector<8x2xf32>
    %c1_149 = arith.constant 1 : index
    %c0_150 = arith.constant 0 : index
    %c0_151 = arith.constant 0 : index
    %162 = vector.load %arg24[%c1_149, %c0_150, %c0_151] : memref<4x32x32xbf16, #tpu.memory_space<vmem>>, vector<1x32x32xbf16>
    %163 = vector.shape_cast %162 : vector<1x32x32xbf16> to vector<32x32xbf16>
    %164 = arith.truncf %146 : vector<2x32xf32> to vector<2x32xbf16>
    %cst_152 = arith.constant dense<0.000000e+00> : vector<2x32xf32>
    %165 = tpu.matmul %164, %163, %cst_152 {dimension_numbers = #tpu.dot_dimension_numbers<[1], [0], [0], [1], [0, 0, 1, 1], [], []>} : vector<2x32xbf16>, vector<32x32xbf16>, vector<2x32xf32> -> vector<2x32xf32>
    %c1_153 = arith.constant 1 : index
    %c0_154 = arith.constant 0 : index
    %c0_155 = arith.constant 0 : index
    %166 = vector.load %arg25[%c1_153, %c0_154, %c0_155] : memref<4x1x32xf32, #tpu.memory_space<vmem>>, vector<1x1x32xf32>
    %167 = vector.shape_cast %166 : vector<1x1x32xf32> to vector<1x32xf32>
    %168 = vector.broadcast %167 : vector<1x32xf32> to vector<2x32xf32>
    %169 = arith.addf %165, %168 : vector<2x32xf32>
    %cst_156 = arith.constant 0.000000e+00 : f32
    %170 = vector.broadcast %cst_156 : f32 to vector<2x32xf32>
    %171 = arith.maximumf %169, %170 : vector<2x32xf32>
    %cst_157 = arith.constant dense<0.000000e+00> : vector<8x32xf32>
    %172 = tpu.matmul %161, %171, %cst_157 {dimension_numbers = #tpu.dot_dimension_numbers<[1], [0], [0], [1], [0, 0, 1, 1], [], []>} : vector<8x2xf32>, vector<2x32xf32>, vector<8x32xf32> -> vector<8x32xf32>
    %173 = arith.addf %159, %172 : vector<8x32xf32>
    %c2_158 = arith.constant 2 : index
    %c0_159 = arith.constant 0 : index
    %c0_160 = arith.constant 0 : index
    %174 = vector.load %arg23[%c2_158, %c0_159, %c0_160] : memref<4x8x2xf32, #tpu.memory_space<vmem>>, vector<1x8x2xf32>
    %175 = vector.shape_cast %174 : vector<1x8x2xf32> to vector<8x2xf32>
    %c2_161 = arith.constant 2 : index
    %c0_162 = arith.constant 0 : index
    %c0_163 = arith.constant 0 : index
    %176 = vector.load %arg24[%c2_161, %c0_162, %c0_163] : memref<4x32x32xbf16, #tpu.memory_space<vmem>>, vector<1x32x32xbf16>
    %177 = vector.shape_cast %176 : vector<1x32x32xbf16> to vector<32x32xbf16>
    %178 = arith.truncf %146 : vector<2x32xf32> to vector<2x32xbf16>
    %cst_164 = arith.constant dense<0.000000e+00> : vector<2x32xf32>
    %179 = tpu.matmul %178, %177, %cst_164 {dimension_numbers = #tpu.dot_dimension_numbers<[1], [0], [0], [1], [0, 0, 1, 1], [], []>} : vector<2x32xbf16>, vector<32x32xbf16>, vector<2x32xf32> -> vector<2x32xf32>
    %c2_165 = arith.constant 2 : index
    %c0_166 = arith.constant 0 : index
    %c0_167 = arith.constant 0 : index
    %180 = vector.load %arg25[%c2_165, %c0_166, %c0_167] : memref<4x1x32xf32, #tpu.memory_space<vmem>>, vector<1x1x32xf32>
    %181 = vector.shape_cast %180 : vector<1x1x32xf32> to vector<1x32xf32>
    %182 = vector.broadcast %181 : vector<1x32xf32> to vector<2x32xf32>
    %183 = arith.addf %179, %182 : vector<2x32xf32>
    %cst_168 = arith.constant 0.000000e+00 : f32
    %184 = vector.broadcast %cst_168 : f32 to vector<2x32xf32>
    %185 = arith.maximumf %183, %184 : vector<2x32xf32>
    %cst_169 = arith.constant dense<0.000000e+00> : vector<8x32xf32>
    %186 = tpu.matmul %175, %185, %cst_169 {dimension_numbers = #tpu.dot_dimension_numbers<[1], [0], [0], [1], [0, 0, 1, 1], [], []>} : vector<8x2xf32>, vector<2x32xf32>, vector<8x32xf32> -> vector<8x32xf32>
    %187 = arith.addf %173, %186 : vector<8x32xf32>
    %c3_170 = arith.constant 3 : index
    %c0_171 = arith.constant 0 : index
    %c0_172 = arith.constant 0 : index
    %188 = vector.load %arg23[%c3_170, %c0_171, %c0_172] : memref<4x8x2xf32, #tpu.memory_space<vmem>>, vector<1x8x2xf32>
    %189 = vector.shape_cast %188 : vector<1x8x2xf32> to vector<8x2xf32>
    %c3_173 = arith.constant 3 : index
    %c0_174 = arith.constant 0 : index
    %c0_175 = arith.constant 0 : index
    %190 = vector.load %arg24[%c3_173, %c0_174, %c0_175] : memref<4x32x32xbf16, #tpu.memory_space<vmem>>, vector<1x32x32xbf16>
    %191 = vector.shape_cast %190 : vector<1x32x32xbf16> to vector<32x32xbf16>
    %192 = arith.truncf %146 : vector<2x32xf32> to vector<2x32xbf16>
    %cst_176 = arith.constant dense<0.000000e+00> : vector<2x32xf32>
    %193 = tpu.matmul %192, %191, %cst_176 {dimension_numbers = #tpu.dot_dimension_numbers<[1], [0], [0], [1], [0, 0, 1, 1], [], []>} : vector<2x32xbf16>, vector<32x32xbf16>, vector<2x32xf32> -> vector<2x32xf32>
    %c3_177 = arith.constant 3 : index
    %c0_178 = arith.constant 0 : index
    %c0_179 = arith.constant 0 : index
    %194 = vector.load %arg25[%c3_177, %c0_178, %c0_179] : memref<4x1x32xf32, #tpu.memory_space<vmem>>, vector<1x1x32xf32>
    %195 = vector.shape_cast %194 : vector<1x1x32xf32> to vector<1x32xf32>
    %196 = vector.broadcast %195 : vector<1x32xf32> to vector<2x32xf32>
    %197 = arith.addf %193, %196 : vector<2x32xf32>
    %cst_180 = arith.constant 0.000000e+00 : f32
    %198 = vector.broadcast %cst_180 : f32 to vector<2x32xf32>
    %199 = arith.maximumf %197, %198 : vector<2x32xf32>
    %cst_181 = arith.constant dense<0.000000e+00> : vector<8x32xf32>
    %200 = tpu.matmul %189, %199, %cst_181 {dimension_numbers = #tpu.dot_dimension_numbers<[1], [0], [0], [1], [0, 0, 1, 1], [], []>} : vector<8x2xf32>, vector<2x32xf32>, vector<8x32xf32> -> vector<8x32xf32>
    %201 = arith.addf %187, %200 : vector<8x32xf32>
    %c0_182 = arith.constant 0 : index
    %c0_183 = arith.constant 0 : index
    %202 = vector.load %arg26[%c0_182, %c0_183] : memref<32x64xbf16, #tpu.memory_space<vmem>>, vector<32x64xbf16>
    %203 = arith.truncf %201 : vector<8x32xf32> to vector<8x32xbf16>
    %cst_184 = arith.constant dense<0.000000e+00> : vector<8x64xf32>
    %204 = tpu.matmul %203, %202, %cst_184 {dimension_numbers = #tpu.dot_dimension_numbers<[1], [0], [0], [1], [0, 0, 1, 1], [], []>} : vector<8x32xbf16>, vector<32x64xbf16>, vector<8x64xf32> -> vector<8x64xf32>
    %c0_185 = arith.constant 0 : index
    %c0_186 = arith.constant 0 : index
    %205 = vector.load %arg27[%c0_185, %c0_186] : memref<1x64xf32, #tpu.memory_space<vmem>>, vector<1x64xf32>
    %206 = vector.broadcast %205 : vector<1x64xf32> to vector<8x64xf32>
    %207 = arith.addf %204, %206 : vector<8x64xf32>
    %cst_187 = arith.constant 0.000000e+00 : f32
    %208 = vector.broadcast %cst_187 : f32 to vector<8x64xf32>
    %209 = arith.maximumf %207, %208 : vector<8x64xf32>
    %c0_188 = arith.constant 0 : index
    %c0_189 = arith.constant 0 : index
    %210 = vector.load %arg28[%c0_188, %c0_189] : memref<64x64xbf16, #tpu.memory_space<vmem>>, vector<64x64xbf16>
    %211 = arith.truncf %209 : vector<8x64xf32> to vector<8x64xbf16>
    %cst_190 = arith.constant dense<0.000000e+00> : vector<8x64xf32>
    %212 = tpu.matmul %211, %210, %cst_190 {dimension_numbers = #tpu.dot_dimension_numbers<[1], [0], [0], [1], [0, 0, 1, 1], [], []>} : vector<8x64xbf16>, vector<64x64xbf16>, vector<8x64xf32> -> vector<8x64xf32>
    %c0_191 = arith.constant 0 : index
    %c0_192 = arith.constant 0 : index
    %213 = vector.load %arg29[%c0_191, %c0_192] : memref<1x64xf32, #tpu.memory_space<vmem>>, vector<1x64xf32>
    %214 = vector.broadcast %213 : vector<1x64xf32> to vector<8x64xf32>
    %215 = arith.addf %212, %214 : vector<8x64xf32>
    %216 = arith.negf %215 : vector<8x64xf32>
    %217 = math.exp %216 : vector<8x64xf32>
    %cst_193 = arith.constant 1.000000e+00 : f32
    %218 = vector.broadcast %cst_193 : f32 to vector<8x64xf32>
    %219 = arith.addf %218, %217 : vector<8x64xf32>
    %220 = arith.divf %218, %219 : vector<8x64xf32>
    %c0_194 = arith.constant 0 : index
    %c0_195 = arith.constant 0 : index
    %c0_196 = arith.constant 0 : index
    %221 = vector.load %arg30[%c0_194, %c0_195, %c0_196] : memref<4x32x8xf32, #tpu.memory_space<vmem>>, vector<1x32x8xf32>
    %222 = vector.shape_cast %221 : vector<1x32x8xf32> to vector<32x8xf32>
    %c0_197 = arith.constant 0 : index
    %c0_198 = arith.constant 0 : index
    %c0_199 = arith.constant 0 : index
    %223 = vector.load %arg31[%c0_197, %c0_198, %c0_199] : memref<4x64x16xf32, #tpu.memory_space<vmem>>, vector<1x64x16xf32>
    %224 = vector.shape_cast %223 : vector<1x64x16xf32> to vector<64x16xf32>
    %cst_200 = arith.constant dense<0.000000e+00> : vector<8x16xf32>
    %225 = tpu.matmul %220, %224, %cst_200 {dimension_numbers = #tpu.dot_dimension_numbers<[1], [0], [0], [1], [0, 0, 1, 1], [], []>} : vector<8x64xf32>, vector<64x16xf32>, vector<8x16xf32> -> vector<8x16xf32>
    %cst_201 = arith.constant dense<0.000000e+00> : vector<32x16xf32>
    %226 = tpu.matmul %222, %225, %cst_201 {dimension_numbers = #tpu.dot_dimension_numbers<[1], [0], [0], [1], [0, 0, 1, 1], [], []>} : vector<32x8xf32>, vector<8x16xf32>, vector<32x16xf32> -> vector<32x16xf32>
    %c1_202 = arith.constant 1 : index
    %c0_203 = arith.constant 0 : index
    %c0_204 = arith.constant 0 : index
    %227 = vector.load %arg30[%c1_202, %c0_203, %c0_204] : memref<4x32x8xf32, #tpu.memory_space<vmem>>, vector<1x32x8xf32>
    %228 = vector.shape_cast %227 : vector<1x32x8xf32> to vector<32x8xf32>
    %c1_205 = arith.constant 1 : index
    %c0_206 = arith.constant 0 : index
    %c0_207 = arith.constant 0 : index
    %229 = vector.load %arg31[%c1_205, %c0_206, %c0_207] : memref<4x64x16xf32, #tpu.memory_space<vmem>>, vector<1x64x16xf32>
    %230 = vector.shape_cast %229 : vector<1x64x16xf32> to vector<64x16xf32>
    %cst_208 = arith.constant dense<0.000000e+00> : vector<8x16xf32>
    %231 = tpu.matmul %220, %230, %cst_208 {dimension_numbers = #tpu.dot_dimension_numbers<[1], [0], [0], [1], [0, 0, 1, 1], [], []>} : vector<8x64xf32>, vector<64x16xf32>, vector<8x16xf32> -> vector<8x16xf32>
    %cst_209 = arith.constant dense<0.000000e+00> : vector<32x16xf32>
    %232 = tpu.matmul %228, %231, %cst_209 {dimension_numbers = #tpu.dot_dimension_numbers<[1], [0], [0], [1], [0, 0, 1, 1], [], []>} : vector<32x8xf32>, vector<8x16xf32>, vector<32x16xf32> -> vector<32x16xf32>
    %233 = arith.addf %226, %232 : vector<32x16xf32>
    %c2_210 = arith.constant 2 : index
    %c0_211 = arith.constant 0 : index
    %c0_212 = arith.constant 0 : index
    %234 = vector.load %arg30[%c2_210, %c0_211, %c0_212] : memref<4x32x8xf32, #tpu.memory_space<vmem>>, vector<1x32x8xf32>
    %235 = vector.shape_cast %234 : vector<1x32x8xf32> to vector<32x8xf32>
    %c2_213 = arith.constant 2 : index
    %c0_214 = arith.constant 0 : index
    %c0_215 = arith.constant 0 : index
    %236 = vector.load %arg31[%c2_213, %c0_214, %c0_215] : memref<4x64x16xf32, #tpu.memory_space<vmem>>, vector<1x64x16xf32>
    %237 = vector.shape_cast %236 : vector<1x64x16xf32> to vector<64x16xf32>
    %cst_216 = arith.constant dense<0.000000e+00> : vector<8x16xf32>
    %238 = tpu.matmul %220, %237, %cst_216 {dimension_numbers = #tpu.dot_dimension_numbers<[1], [0], [0], [1], [0, 0, 1, 1], [], []>} : vector<8x64xf32>, vector<64x16xf32>, vector<8x16xf32> -> vector<8x16xf32>
    %cst_217 = arith.constant dense<0.000000e+00> : vector<32x16xf32>
    %239 = tpu.matmul %235, %238, %cst_217 {dimension_numbers = #tpu.dot_dimension_numbers<[1], [0], [0], [1], [0, 0, 1, 1], [], []>} : vector<32x8xf32>, vector<8x16xf32>, vector<32x16xf32> -> vector<32x16xf32>
    %240 = arith.addf %233, %239 : vector<32x16xf32>
    %c3_218 = arith.constant 3 : index
    %c0_219 = arith.constant 0 : index
    %c0_220 = arith.constant 0 : index
    %241 = vector.load %arg30[%c3_218, %c0_219, %c0_220] : memref<4x32x8xf32, #tpu.memory_space<vmem>>, vector<1x32x8xf32>
    %242 = vector.shape_cast %241 : vector<1x32x8xf32> to vector<32x8xf32>
    %c3_221 = arith.constant 3 : index
    %c0_222 = arith.constant 0 : index
    %c0_223 = arith.constant 0 : index
    %243 = vector.load %arg31[%c3_221, %c0_222, %c0_223] : memref<4x64x16xf32, #tpu.memory_space<vmem>>, vector<1x64x16xf32>
    %244 = vector.shape_cast %243 : vector<1x64x16xf32> to vector<64x16xf32>
    %cst_224 = arith.constant dense<0.000000e+00> : vector<8x16xf32>
    %245 = tpu.matmul %220, %244, %cst_224 {dimension_numbers = #tpu.dot_dimension_numbers<[1], [0], [0], [1], [0, 0, 1, 1], [], []>} : vector<8x64xf32>, vector<64x16xf32>, vector<8x16xf32> -> vector<8x16xf32>
    %cst_225 = arith.constant dense<0.000000e+00> : vector<32x16xf32>
    %246 = tpu.matmul %242, %245, %cst_225 {dimension_numbers = #tpu.dot_dimension_numbers<[1], [0], [0], [1], [0, 0, 1, 1], [], []>} : vector<32x8xf32>, vector<8x16xf32>, vector<32x16xf32> -> vector<32x16xf32>
    %247 = arith.addf %240, %246 : vector<32x16xf32>
    %c0_226 = arith.constant 0 : index
    %c0_227 = arith.constant 0 : index
    %248 = vector.load %arg32[%c0_226, %c0_227] : memref<32x16xf32, #tpu.memory_space<vmem>>, vector<32x16xf32>
    tpu.vector_store %arg32[%c0_226, %c0_227], %247 {strides = array<i32>} : memref<32x16xf32, #tpu.memory_space<vmem>>, vector<32x16xf32>,
    return
  }
  func.func @transform_0(%arg0: i32) -> (i32, i32) {
    %c0_i32 = arith.constant 0 : i32
    %c0_i32_0 = arith.constant 0 : i32
    %c0_i32_1 = arith.constant 0 : i32
    return %c0_i32, %c0_i32_0 : i32, i32
  }
  func.func @transform_1(%arg0: i32) -> (i32, i32, i32) {
    %c0_i32 = arith.constant 0 : i32
    %c0_i32_0 = arith.constant 0 : i32
    %c0_i32_1 = arith.constant 0 : i32
    %c0_i32_2 = arith.constant 0 : i32
    return %c0_i32, %c0_i32_0, %c0_i32_1 : i32, i32, i32
  }
  func.func @transform_2(%arg0: i32) -> (i32, i32, i32) {
    %c0_i32 = arith.constant 0 : i32
    %c0_i32_0 = arith.constant 0 : i32
    %c0_i32_1 = arith.constant 0 : i32
    %c0_i32_2 = arith.constant 0 : i32
    return %c0_i32, %c0_i32_0, %c0_i32_1 : i32, i32, i32
  }
  func.func @transform_3(%arg0: i32) -> (i32, i32) {
    %c0_i32 = arith.constant 0 : i32
    %c0_i32_0 = arith.constant 0 : i32
    %c0_i32_1 = arith.constant 0 : i32
    return %c0_i32, %c0_i32_0 : i32, i32
  }
  func.func @transform_4(%arg0: i32) -> (i32, i32, i32) {
    %c0_i32 = arith.constant 0 : i32
    %c0_i32_0 = arith.constant 0 : i32
    %c0_i32_1 = arith.constant 0 : i32
    %c0_i32_2 = arith.constant 0 : i32
    return %c0_i32, %c0_i32_0, %c0_i32_1 : i32, i32, i32
  }
  func.func @transform_5(%arg0: i32) -> (i32, i32, i32) {
    %c0_i32 = arith.constant 0 : i32
    %c0_i32_0 = arith.constant 0 : i32
    %c0_i32_1 = arith.constant 0 : i32
    %c0_i32_2 = arith.constant 0 : i32
    return %c0_i32, %c0_i32_0, %c0_i32_1 : i32, i32, i32
  }
  func.func @transform_6(%arg0: i32) -> (i32, i32, i32) {
    %c0_i32 = arith.constant 0 : i32
    %c0_i32_0 = arith.constant 0 : i32
    %c0_i32_1 = arith.constant 0 : i32
    %c0_i32_2 = arith.constant 0 : i32
    return %c0_i32, %c0_i32_0, %c0_i32_1 : i32, i32, i32
  }
  func.func @transform_7(%arg0: i32) -> (i32, i32, i32) {
    %c0_i32 = arith.constant 0 : i32
    %c0_i32_0 = arith.constant 0 : i32
    %c0_i32_1 = arith.constant 0 : i32
    %c0_i32_2 = arith.constant 0 : i32
    return %c0_i32, %c0_i32_0, %c0_i32_1 : i32, i32, i32
  }
  func.func @transform_8(%arg0: i32) -> (i32, i32) {
    %c0_i32 = arith.constant 0 : i32
    %c0_i32_0 = arith.constant 0 : i32
    %c0_i32_1 = arith.constant 0 : i32
    return %c0_i32, %c0_i32_0 : i32, i32
  }
  func.func @transform_9(%arg0: i32) -> (i32, i32, i32) {
    %c0_i32 = arith.constant 0 : i32
    %c0_i32_0 = arith.constant 0 : i32
    %c0_i32_1 = arith.constant 0 : i32
    %c0_i32_2 = arith.constant 0 : i32
    return %c0_i32, %c0_i32_0, %c0_i32_1 : i32, i32, i32
  }
  func.func @transform_10(%arg0: i32) -> (i32, i32, i32) {
    %c0_i32 = arith.constant 0 : i32
    %c0_i32_0 = arith.constant 0 : i32
    %c0_i32_1 = arith.constant 0 : i32
    %c0_i32_2 = arith.constant 0 : i32
    return %c0_i32, %c0_i32_0, %c0_i32_1 : i32, i32, i32
  }
  func.func @transform_11(%arg0: i32) -> (i32, i32, i32) {
    %c0_i32 = arith.constant 0 : i32
    %c0_i32_0 = arith.constant 0 : i32
    %c0_i32_1 = arith.constant 0 : i32
    %c0_i32_2 = arith.constant 0 : i32
    return %c0_i32, %c0_i32_0, %c0_i32_1 : i32, i32, i32
  }
  func.func @transform_12(%arg0: i32) -> (i32, i32, i32) {
    %c0_i32 = arith.constant 0 : i32
    %c0_i32_0 = arith.constant 0 : i32
    %c0_i32_1 = arith.constant 0 : i32
    %c0_i32_2 = arith.constant 0 : i32
    return %c0_i32, %c0_i32_0, %c0_i32_1 : i32, i32, i32
  }
  func.func @transform_13(%arg0: i32) -> (i32, i32) {
    %c0_i32 = arith.constant 0 : i32
    %c0_i32_0 = arith.constant 0 : i32
    %c0_i32_1 = arith.constant 0 : i32
    return %c0_i32, %c0_i32_0 : i32, i32
  }
  func.func @transform_14(%arg0: i32) -> (i32, i32) {
    %c0_i32 = arith.constant 0 : i32
    %c0_i32_0 = arith.constant 0 : i32
    %c0_i32_1 = arith.constant 0 : i32
    return %c0_i32, %c0_i32_0 : i32, i32
  }
  func.func @transform_15(%arg0: i32) -> (i32, i32) {
    %c0_i32 = arith.constant 0 : i32
    %c0_i32_0 = arith.constant 0 : i32
    %c0_i32_1 = arith.constant 0 : i32
    return %c0_i32, %c0_i32_0 : i32, i32
  }
  func.func @transform_16(%arg0: i32) -> (i32, i32) {
    %c0_i32 = arith.constant 0 : i32
    %c0_i32_0 = arith.constant 0 : i32
    %c0_i32_1 = arith.constant 0 : i32
    return %c0_i32, %c0_i32_0 : i32, i32
  }
  func.func @transform_17(%arg0: i32) -> (i32, i32) {
    %c0_i32 = arith.constant 0 : i32
    %c0_i32_0 = arith.constant 0 : i32
    %c0_i32_1 = arith.constant 0 : i32
    return %c0_i32, %c0_i32_0 : i32, i32
  }
  func.func @transform_18(%arg0: i32) -> (i32, i32) {
    %c0_i32 = arith.constant 0 : i32
    %c0_i32_0 = arith.constant 0 : i32
    %c0_i32_1 = arith.constant 0 : i32
    return %c0_i32, %c0_i32_0 : i32, i32
  }
  func.func @transform_19(%arg0: i32) -> (i32, i32) {
    %c0_i32 = arith.constant 0 : i32
    %c0_i32_0 = arith.constant 0 : i32
    %c0_i32_1 = arith.constant 0 : i32
    return %c0_i32, %c0_i32_0 : i32, i32
  }
  func.func @transform_20(%arg0: i32) -> (i32, i32) {
    %c0_i32 = arith.constant 0 : i32
    %c0_i32_0 = arith.constant 0 : i32
    %c0_i32_1 = arith.constant 0 : i32
    return %c0_i32, %c0_i32_0 : i32, i32
  }
  func.func @transform_21(%arg0: i32) -> (i32, i32) {
    %c0_i32 = arith.constant 0 : i32
    %c0_i32_0 = arith.constant 0 : i32
    %c0_i32_1 = arith.constant 0 : i32
    return %c0_i32, %c0_i32_0 : i32, i32
  }
  func.func @transform_22(%arg0: i32) -> (i32, i32, i32) {
    %c0_i32 = arith.constant 0 : i32
    %c0_i32_0 = arith.constant 0 : i32
    %c0_i32_1 = arith.constant 0 : i32
    %c0_i32_2 = arith.constant 0 : i32
    return %c0_i32, %c0_i32_0, %c0_i32_1 : i32, i32, i32
  }
  func.func @transform_23(%arg0: i32) -> (i32, i32, i32) {
    %c0_i32 = arith.constant 0 : i32
    %c0_i32_0 = arith.constant 0 : i32
    %c0_i32_1 = arith.constant 0 : i32
    %c0_i32_2 = arith.constant 0 : i32
    return %c0_i32, %c0_i32_0, %c0_i32_1 : i32, i32, i32
  }
  func.func @transform_24(%arg0: i32) -> (i32, i32, i32) {
    %c0_i32 = arith.constant 0 : i32
    %c0_i32_0 = arith.constant 0 : i32
    %c0_i32_1 = arith.constant 0 : i32
    %c0_i32_2 = arith.constant 0 : i32
    return %c0_i32, %c0_i32_0, %c0_i32_1 : i32, i32, i32
  }
  func.func @transform_25(%arg0: i32) -> (i32, i32) {
    %c0_i32 = arith.constant 0 : i32
    %c0_i32_0 = arith.constant 0 : i32
    %c0_i32_1 = arith.constant 0 : i32
    return %c0_i32, %c0_i32_0 : i32, i32
  }
  func.func @transform_26(%arg0: i32) -> (i32, i32) {
    %c0_i32 = arith.constant 0 : i32
    %c0_i32_0 = arith.constant 0 : i32
    %c0_i32_1 = arith.constant 0 : i32
    return %c0_i32, %c0_i32_0 : i32, i32
  }
  func.func @transform_27(%arg0: i32) -> (i32, i32) {
    %c0_i32 = arith.constant 0 : i32
    %c0_i32_0 = arith.constant 0 : i32
    %c0_i32_1 = arith.constant 0 : i32
    return %c0_i32, %c0_i32_0 : i32, i32
  }
  func.func @transform_28(%arg0: i32) -> (i32, i32) {
    %c0_i32 = arith.constant 0 : i32
    %c0_i32_0 = arith.constant 0 : i32
    %c0_i32_1 = arith.constant 0 : i32
    return %c0_i32, %c0_i32_0 : i32, i32
  }
  func.func @transform_29(%arg0: i32) -> (i32, i32, i32) {
    %c0_i32 = arith.constant 0 : i32
    %c0_i32_0 = arith.constant 0 : i32
    %c0_i32_1 = arith.constant 0 : i32
    %c0_i32_2 = arith.constant 0 : i32
    return %c0_i32, %c0_i32_0, %c0_i32_1 : i32, i32, i32
  }
  func.func @transform_30(%arg0: i32) -> (i32, i32, i32) {
    %c0_i32 = arith.constant 0 : i32
    %c0_i32_0 = arith.constant 0 : i32
    %c0_i32_1 = arith.constant 0 : i32
    %c0_i32_2 = arith.constant 0 : i32
    return %c0_i32, %c0_i32_0, %c0_i32_1 : i32, i32, i32
  }
  func.func @transform_31(%arg0: i32) -> (i32, i32) {
    %c0_i32 = arith.constant 0 : i32
    %c0_i32_0 = arith.constant 0 : i32
    %c0_i32_1 = arith.constant 0 : i32
    return %c0_i32, %c0_i32_0 : i32, i32
  }
}

</mosaic_0001>

<bundles_post_ra>
// kernel: conv_ae_forward.1
= control target key start
LH: loop header
LB: loop body
LE: loop exit
PB: predicated region body
PF: predicated region fallthrough
CT: control target
= control target key end

     0   :  { %s4895_s6 = smov 1   ;;  %s4896_s10 = smov 2   ;;  %s5504_s0 = inlined_call_operand.smem [shape: u32[32], index: -1, kind: input, shape index: {}] }
   0x1   :  { %s4939_s5 = sld [smem:[%s5504_s0]]   ;;  %s4897_s14 = smov 3  }
   0x2   :  { %s4944_s9 = sld [smem:[%s5504_s0 + %s4895_s6]]   ;;  %s4898_s18 = smov 4  }
   0x3   :  { %s4949_s13 = sld [smem:[%s5504_s0 + %s4896_s10]]   ;;  %s4899_s22 = smov 5  }
   0x4   :  { %s4954_s17 = sld [smem:[%s5504_s0 + %s4897_s14]]   ;;  %s4900_s26 = smov 6  }
   0x5   :  { %s4959_s21 = sld [smem:[%s5504_s0 + %s4898_s18]]   ;;  %s4901_s30 = smov 7  }
   0x6   :  { %s4964_s25 = sld [smem:[%s5504_s0 + %s4899_s22]]   ;;  %s4902_s4 = smov 8  }
   0x7   :  { %s4969_s29 = sld [smem:[%s5504_s0 + %s4900_s26]]   ;;  %s4903_s10 = smov 9  }
   0x8   :  { %s4974_s3 = sld [smem:[%s5504_s0 + %s4901_s30]]   ;;  %s4904_s15 = smov 10  }
   0x9   :  { %s4979_s8 = sld [smem:[%s5504_s0 + %s4902_s4]]   ;;  %s4905_s20 = smov 11  }
   0xa   :  { %s4984_s14 = sld [smem:[%s5504_s0 + %s4903_s10]]   ;;  %s4906_s26 = smov 12  }
   0xb   :  { %s4989_s19 = sld [smem:[%s5504_s0 + %s4904_s15]]   ;;  %s4907_s1 = smov 13  }
   0xc   :  { %s4994_s24 = sld [smem:[%s5504_s0 + %s4905_s20]]   ;;  %s4908_s7 = smov 14  }
   0xd   :  { %s4999_s30 = sld [smem:[%s5504_s0 + %s4906_s26]]   ;;  %s4909_s15 = smov 15  }
   0xe   :  { %s5004_s6 = sld [smem:[%s5504_s0 + %s4907_s1]]   ;;  %s4910_s22 = smov 16  }
   0xf   :  { %s5009_s12 = sld [smem:[%s5504_s0 + %s4908_s7]]   ;;  %s4911_s28 = smov 17  }
  0x10   :  { %s5014_s20 = sld [smem:[%s5504_s0 + %s4909_s15]]   ;;  %s4912_s7 = smov 18  }
  0x11   :  { %s5019_s27 = sld [smem:[%s5504_s0 + %s4910_s22]]   ;;  %s4913_s15 = smov 19  }
  0x12   :  { %s5024_s4 = sld [smem:[%s5504_s0 + %s4911_s28]]   ;;  %s4914_s22 = smov 20  }
  0x13   :  { %s4915_s28 = smov 21  }
  0x14   :  { %5510 = sst [smem:[#allocation5_spill]] %s5004_s6 }
  0x15   :  { %s5029_s6 = sld [smem:[%s5504_s0 + %s4912_s7]]   ;;  %s4916_s7 = smov 22  }
  0x16   :  { %5511 = sst [smem:[#allocation6_spill]] %s5014_s20 }
  0x17   :  { %5512 = sst [smem:[#allocation7_spill]] %s5019_s27 }
  0x18   :  { %5513 = sst [smem:[#allocation8_spill]] %s5024_s4 }
  0x19   :  { %s5034_s20 = sld [smem:[%s5504_s0 + %s4913_s15]]   ;;  %s4917_s15 = smov 23  }
  0x1a   :  { %s5039_s27 = sld [smem:[%s5504_s0 + %s4914_s22]]   ;;  %s4918_s22 = smov 24  }
  0x1b   :  { %5514 = sst [smem:[#allocation9_spill]] %s5029_s6 }
  0x1c   :  { %s5044_s4 = sld [smem:[%s5504_s0 + %s4915_s28]]   ;;  %s4919_s28 = smov 25  }
  0x1d   :  { %s5049_s6 = sld [smem:[%s5504_s0 + %s4916_s7]]   ;;  %s4920_s7 = smov 26  }
  0x1f   :  { %5515 = sst [smem:[#allocation10_spill]] %s5034_s20 }
  0x20   :  { %5516 = sst [smem:[#allocation11_spill]] %s5039_s27 }
  0x21   :  { %s5054_s20 = sld [smem:[%s5504_s0 + %s4917_s15]]   ;;  %s4921_s15 = smov 27  }
  0x22   :  { %5517 = sst [smem:[#allocation12_spill]] %s5044_s4 }
  0x23   :  { %5518 = sst [smem:[#allocation13_spill]] %s5049_s6 }
  0x24   :  { %s5059_s27 = sld [smem:[%s5504_s0 + %s4918_s22]]   ;;  %s4922_s22 = smov 28  }
  0x25   :  { %s5064_s4 = sld [smem:[%s5504_s0 + %s4919_s28]]   ;;  %s4923_s28 = smov 29  }
  0x26   :  { %s5069_s6 = sld [smem:[%s5504_s0 + %s4920_s7]]   ;;  %s4924_s7 = smov 30  }
  0x27   :  { %5519 = sst [smem:[#allocation14_spill]] %s5054_s20 }
  0x28   :  { %s5074_s20 = sld [smem:[%s5504_s0 + %s4921_s15]]   ;;  %s4925_s15 = smov 31  }
  0x2a   :  { %5520 = sst [smem:[#allocation15_spill]] %s5059_s27 }
  0x2b   :  { %5521 = sst [smem:[#allocation16_spill]] %s5064_s4 }
  0x2c   :  { %5522 = sst [smem:[#allocation17_spill]] %s5069_s6 }
  0x2d   :  { %s5079_s27 = sld [smem:[%s5504_s0 + %s4922_s22]]  }
  0x2e   :  { %5523 = sst [smem:[#allocation18_spill]] %s5074_s20 }
  0x2f   :  { %s5084_s4 = sld [smem:[%s5504_s0 + %s4923_s28]]  }
  0x30   :  { %s5089_s6 = sld [smem:[%s5504_s0 + %s4924_s7]]  }
  0x31   :  { %s5094_s20 = sld [smem:[%s5504_s0 + %s4925_s15]]  }
  0x32   :  { %v135_v0 = vld [vmem:[%s4939_s5 + $0x18] sm:$0xff]  ;;  %v134_v1 = vld [vmem:[%s4939_s5 + $0x10] sm:$0xff]  ;;  %vm140_vm0 = vcmask 261120   ;;  %v133_v2 = vld [vmem:[%s4939_s5 + $0x8] sm:$0xff]  ;;  %vm253_vm1 = vcmask 130048  }
  0x33   :  { %4344 = vmatprep.subr.mxu0 %v135_v0  ;;  %v132_v3 = vld [vmem:[%s4939_s5] sm:$0xff]  ;;  %v137_v6 = vld [vmem:[%s4949_s13 + $0x8] sm:$0xff]  ;;  %v138_v8 = vld [vmem:[%s4949_s13 + $0x10] sm:$0xff]  ;;  %v246_v9 = vpack.c.bf16 %v135_v0, %v134_v1 }
  0x34   :  { %v136_v4 = vld [vmem:[%s4949_s13] sm:$0xff]  ;;  %4345 = vmatpush3.msra.mxu0 %v135_v0  ;;  %v245_v5 = vpack.c.bf16 %v133_v2, %v132_v3  ;;  %v4834_v7 = vld [vmem:[%s4944_s9 + $0x8] sm:$0xff]   ;;  %v139_v10 = vld [vmem:[%s4949_s13 + $0x18] sm:$0xff] }
  0x35   :  { %4352 = vmatprep.mubr.msk.f32.mxu0 %vm140_vm0, %v136_v4  ;;  %4346 = vmatprep.subr.mxu0 %v134_v1  ;;  %v3911_v11 = vld [vmem:[%s4949_s13 + $0x20] sm:$0xff]  ;;  %v3912_v12 = vld [vmem:[%s4949_s13 + $0x28] sm:$0xff]  ;;  %v3913_v13 = vld [vmem:[%s4949_s13 + $0x30] sm:$0xff] }
  0x36   :  { %4347 = vmatpush3.msra.mxu0 %v134_v1  ;;  %4360 = vmatprep.mubr.msk.bf16.mxu1 %vm253_vm1, %v245_v5  ;;  %v3914_v14 = vld [vmem:[%s4949_s13 + $0x38] sm:$0xff] }
  0x37   :  { %4348 = vmatprep.subr.mxu0 %v133_v2  ;;  %4358 = vmatprep.subr.bf16.mxu1 %v4834_v7 }
  0x38   :  { %4349 = vmatpush3.msra.mxu0 %v133_v2  ;;  %4359 = vmatpush3.bf16.msra.mxu1 %v4834_v7 }
  0x39   :  { %4350 = vmatprep.subr.mxu0 %v132_v3 }
  0x3a   :  { %4351 = vmatpush3.msra.mxu0 %v132_v3 }
  0x3b   :  { %4353 = vmatmul.mubr.msk.f32.vlgmr.msra.gmra.mxu0 %vm140_vm0, %v137_v6  ;;  %4370 = vmatprep.subr.mxu0 %v135_v0 }
  0x3c   :  { %4371 = vmatpush3.msra.mxu0 %v135_v0  ;;  %4355 = vmatprep.mubr.msk.f32.mxu0 %vm140_vm0, %v138_v8 }
  0x3d   :  { %4372 = vmatprep.subr.mxu0 %v134_v1  ;;  %4361 = vmatmul.mubr.msk.bf16.vlgmr.msra.gmra.mxu1 %vm253_vm1, %v246_v9 }
  0x3e   :  { %4373 = vmatpush3.msra.mxu0 %v134_v1 }
  0x3f   :  { %4356 = vmatmul.mubr.msk.f32.gmra.mxu0 %vm140_vm0, %v139_v10  ;;  %4374 = vmatprep.subr.mxu0 %v133_v2 }
  0x40   :  { %4375 = vmatpush3.msra.mxu0 %v133_v2  ;;  %4378 = vmatprep.mubr.msk.f32.mxu0 %vm140_vm0, %v3911_v11 }
  0x41   :  { %4376 = vmatprep.subr.mxu0 %v132_v3 }
  0x42   :  { %4377 = vmatpush3.msra.mxu0 %v132_v3 }
  0x43   :  { %4379 = vmatmul.mubr.msk.f32.vlgmr.msra.gmra.mxu0 %vm140_vm0, %v3912_v12 }
  0x44   :  { %4381 = vmatprep.mubr.msk.f32.mxu0 %vm140_vm0, %v3913_v13 }
  0x47   :  { %4382 = vmatmul.mubr.msk.f32.gmra.mxu0 %vm140_vm0, %v3914_v14 }
  0x48   :  { %68 = vsyncpa [#allocation3], 0  ;;  %v4835_v15 = vld [vmem:[%s4944_s9] sm:$0xff]   ;;  %v4836_v16 = vld [vmem:[%s4944_s9 + $0x10] sm:$0xff]   ;;  %vm734_vm2 = vcmask 523264   ;;  %vm4927_vm3 = vmmov 0  }
  0x49   :  { %4364 = vmatprep.subr.bf16.mxu1 %v4835_v15  ;;  %v557_v29 = vld [vmem:[%s4959_s21] sm:$0xff]  ;;  %v3927_v30 = vld [vmem:[%s4959_s21 + $0x10] sm:$0xff]  ;;  %v558_v60 = vld [vmem:[%s4959_s21 + $0x8] sm:$0xff]  ;;  %vm1579_vm4 = vcmask 64512   ;;  %s5524_s0 = sld [smem:[#allocation5_spill]]  ;;  %vm2272_vm5 = vcmask 1043456  }
  0x4a   :  { %4365 = vmatpush3.bf16.msra.mxu1 %v4835_v15  ;;  %4398 = vmatprep.mubr.msk.f32.mxu0 %vm140_vm0, %v557_v29  ;;  %v3924_v44 = vld [vmem:[%s4954_s17] ss:$0 sm:$0xff]  ;;  %v3928_v61 = vld [vmem:[%s4959_s21 + $0x18] sm:$0xff]  ;;  %v732_v0 = vld [vmem:[%s4964_s25 + $0x30] sm:$0xff]  ;;  %s5525_s5 = sld [smem:[#allocation7_spill]]  ;;  %vm2518_vm6 = vcmask 1041408  }
  0x4b   :  { %4384 = vmatprep.subr.bf16.mxu1 %v4836_v16  ;;  %v733_v62 = vld [vmem:[%s4964_s25 + $0x38] sm:$0xff]  ;;  %v3939_v1 = vld [vmem:[%s4964_s25 + $0x70] sm:$0xff]  ;;  %v731_v2 = vld [vmem:[%s4964_s25 + $0x28] sm:$0xff]  ;;  %s5526_s9 = sld [smem:[#allocation6_spill]]  ;;  %vm2514_vm7 = vcmask 15360  }
  0x4c   :  { %v3940_v63 = vld [vmem:[%s4964_s25 + $0x78] sm:$0xff]  ;;  %v3938_v3 = vld [vmem:[%s4964_s25 + $0x68] sm:$0xff]  ;;  %v730_v4 = vld [vmem:[%s4964_s25 + $0x20] sm:$0xff]  ;;  %s5527_s13 = sld [smem:[#allocation9_spill]] }
  0x4d   :  { %v3937_v5 = vld [vmem:[%s4964_s25 + $0x60] sm:$0xff]  ;;  %v729_v6 = vld [vmem:[%s4964_s25 + $0x18] sm:$0xff]  ;;  %v728_v8 = vld [vmem:[%s4964_s25 + $0x10] sm:$0xff]  ;;  %s5528_s17 = sld [smem:[#allocation8_spill]] }
  0x4e   :  { %v3936_v7 = vld [vmem:[%s4964_s25 + $0x58] sm:$0xff]  ;;  %v3935_v9 = vld [vmem:[%s4964_s25 + $0x50] sm:$0xff]  ;;  %v727_v10 = vld [vmem:[%s4964_s25 + $0x8] sm:$0xff]  ;;  %s5529_s21 = sld [smem:[#allocation11_spill]] }
  0x4f   :  { %v3934_v11 = vld [vmem:[%s4964_s25 + $0x48] sm:$0xff]  ;;  %v726_v12 = vld [vmem:[%s4964_s25] sm:$0xff] }
  0x50   :  { %v3933_v13 = vld [vmem:[%s4964_s25 + $0x40] sm:$0xff]  ;;  %v903_v29 = vld [vmem:[%s4974_s3 + $0x8] sm:$0xff]  ;;  %s5530_s25 = sld [smem:[#allocation10_spill]] }
  0xfb   :  { %v4354_v17 = vpop.f32.mrf.mxu0 }
  0xfd   :  { %v219_v18 = vpop.f32.mrf.mxu0  ;;  %v4362_v31 = vpop.f32.mrf.mxu1 }
  0xfe   :  { %v240_v19 = vpack.c.bf16 %v4354_v17, %v219_v18 }
  0xff   :  { %v4357_v20 = vpop.f32.mrf.mxu0  ;;  %v294_v32 = vpop.f32.mrf.mxu1 }
 0x100   :  { %4366 = vmatprep.mubr.msk.bf16.mxu1 %vm253_vm1, %v240_v19 }
 0x101   :  { %v229_v21 = vpop.f32.mrf.mxu0  ;;  %v4363_v33 = vpop.f32.mrf.mxu1 }
 0x102   :  { %v241_v22 = vpack.c.bf16 %v4357_v20, %v229_v21  ;;  %v902_v20 = vld [vmem:[%s4974_s3] sm:$0xff]  ;;  %v4926_v21 = vmov 0.0  }
 0x103   :  { %v4380_v23 = vpop.f32.mrf.mxu0  ;;  %v297_v34 = vpop.f32.mrf.mxu1 }
 0x104   :  { %4367 = vmatmul.mubr.msk.bf16.vlgmr.msra.gmra.mxu1 %vm253_vm1, %v241_v22  ;;  %v4839_v22 = vld [vmem:[%s4969_s29 + $0x8] sm:$0xff]  }
 0x105   :  { %v453_v24 = vpop.f32.mrf.mxu0  ;;  %4385 = vmatpush3.bf16.msra.mxu1 %v4836_v16 }
 0x106   :  { %v475_v25 = vpack.c.bf16 %v4380_v23, %v453_v24 }
 0x107   :  { %v4383_v26 = vpop.f32.mrf.mxu0 }
 0x108   :  { %4386 = vmatprep.mubr.msk.bf16.mxu1 %vm253_vm1, %v475_v25 }
 0x109   :  { %v463_v27 = vpop.f32.mrf.mxu0 }
 0x10a   :  { %v476_v28 = vpack.c.bf16 %v4383_v26, %v463_v27 }
 0x10c   :  { %4387 = vmatmul.mubr.msk.bf16.vlgmr.msra.gmra.mxu1 %vm253_vm1, %v476_v28 }
 0x10d   :  { %4409 = vmatprep.mubr.msk.f32.mxu1 %vm140_vm0, %v3927_v30  ;;  %v4837_v30 = vld [vmem:[%s4969_s29 + $0x18] sm:$0xff]  }
 0x1c4   :  { %v4368_v35 = vpop.f32.mrf.mxu1 }
 0x1c5   :  { %v364_v40 = vadd.f32 %v4368_v35, %v4362_v31  ;;  %v4838_v31 = vld [vmem:[%s4969_s29 + $0x10] sm:$0xff]   ;;  %v4840_v35 = vld [vmem:[%s4969_s29] sm:$0xff]  }
 0x1c6   :  { %v355_v36 = vpop.f32.mrf.mxu1 }
 0x1c7   :  { %v356_v46 = vadd.f32 %v355_v36, %v294_v32 }
 0x1c8   :  { %v4369_v37 = vpop.f32.mrf.mxu1 }
 0x1c9   :  { %v367_v42 = vadd.f32 %v4369_v37, %v4363_v33  ;;  %v3955_v33 = vld [vmem:[%s4974_s3 + $0x10] sm:$0xff] }
 0x1ca   :  { %v358_v38 = vpop.f32.mrf.mxu1 }
 0x1cb   :  { %v359_v47 = vadd.f32 %v358_v38, %v297_v34  ;;  %v3956_v34 = vld [vmem:[%s4974_s3 + $0x18] sm:$0xff]  ;;  %v4841_v38 = vld [vmem:[%s4969_s29 + $0x28] sm:$0xff]   ;;  %s5532_s3 = sld [smem:[#allocation12_spill]] }
 0x1cc   :  { %v4388_v39 = vpop.f32.mrf.mxu1 }
 0x1cd   :  { %v540_v43 = vadd.f32 %v4388_v39, %v364_v40  ;;  %v4842_v40 = vld [vmem:[%s4969_s29 + $0x20] sm:$0xff]   ;;  %s5531_s29 = sld [smem:[#allocation14_spill]] }
 0x1ce   :  { %v523_v41 = vpop.f32.mrf.mxu1 }
 0x1cf   :  { %v551_v50 = vadd.f32 %v3924_v44, %v540_v43  ;;  %v538_v51 = vadd.f32 %v523_v41, %v356_v46 }
 0x1d0   :  { %v4389_v45 = vpop.f32.mrf.mxu1 }
 0x1d1   :  { %v541_v48 = vadd.f32 %v4389_v45, %v367_v42  ;;  %v555_v56 = vmax.f32 %v551_v50, 0.0  ;;  %v549_v57 = vadd.f32 %v3924_v44, %v538_v51  ;;  %v1422_v50 = vld [vmem:[%s4989_s19 + $0x28] sm:$0xff]  ;;  %v1421_v51 = vld [vmem:[%s4989_s19 + $0x20] sm:$0xff] }
 0x1d2   :  { %v526_v49 = vpop.f32.mrf.mxu1 }
 0x1d3   :  { %v552_v52 = vadd.f32 %v3924_v44, %v541_v48  ;;  %v539_v53 = vadd.f32 %v526_v49, %v359_v47  ;;  %v553_v59 = vmax.f32 %v549_v57, 0.0  ;;  %v1424_v48 = vld [vmem:[%s4989_s19 + $0x38] sm:$0xff]  ;;  %v1423_v49 = vld [vmem:[%s4989_s19 + $0x30] sm:$0xff] }
 0x1d5   :  { %v556_v54 = vmax.f32 %v552_v52, 0.0  ;;  %v550_v55 = vadd.f32 %v3924_v44, %v539_v53 }
 0x1d7   :  { %4390 = vmatprep.subr.mxu0 %v556_v54  ;;  %4401 = vmatprep.subr.mxu1 %v556_v54  ;;  %v554_v58 = vmax.f32 %v550_v55, 0.0 }
 0x1d8   :  { %4391 = vmatpush3.msra.mxu0 %v556_v54  ;;  %4402 = vmatpush3.msra.mxu1 %v556_v54 }
 0x1d9   :  { %4392 = vmatprep.subr.mxu0 %v555_v56  ;;  %4403 = vmatprep.subr.mxu1 %v555_v56 }
 0x1da   :  { %4393 = vmatpush3.msra.mxu0 %v555_v56  ;;  %4404 = vmatpush3.msra.mxu1 %v555_v56 }
 0x1db   :  { %4394 = vmatprep.subr.mxu0 %v554_v58  ;;  %4405 = vmatprep.subr.mxu1 %v554_v58 }
 0x1dc   :  { %4395 = vmatpush3.msra.mxu0 %v554_v58  ;;  %4406 = vmatpush3.msra.mxu1 %v554_v58 }
 0x1dd   :  { %4396 = vmatprep.subr.mxu0 %v553_v59  ;;  %4407 = vmatprep.subr.mxu1 %v553_v59 }
 0x1de   :  { %4397 = vmatpush3.msra.mxu0 %v553_v59  ;;  %4408 = vmatpush3.msra.mxu1 %v553_v59 }
 0x1df   :  { %4399 = vmatmul.mubr.msk.f32.vlgmr.msra.gmra.mxu0 %vm140_vm0, %v558_v60  ;;  %4410 = vmatmul.mubr.msk.f32.vlgmr.msra.gmra.mxu1 %vm140_vm0, %v3928_v61  ;;  %v3966_v61 = vld [vmem:[%s4979_s8] ss:$0 sm:$0xff]  ;;  %s5533_s8 = sld [smem:[#allocation15_spill]] }
 0x1e0   :  { %4412 = vmatprep.subr.mxu0 %v733_v62  ;;  %4431 = vmatprep.subr.mxu1 %v3940_v63 }
 0x1e1   :  { %4413 = vmatpush3.msra.mxu0 %v733_v62  ;;  %4432 = vmatpush3.msra.mxu1 %v3940_v63 }
 0x1e2   :  { %4414 = vmatprep.subr.mxu0 %v732_v0  ;;  %4433 = vmatprep.subr.mxu1 %v3939_v1 }
 0x1e3   :  { %4415 = vmatpush3.msra.mxu0 %v732_v0  ;;  %4434 = vmatpush3.msra.mxu1 %v3939_v1 }
 0x1e4   :  { %4416 = vmatprep.subr.mxu0 %v731_v2  ;;  %4435 = vmatprep.subr.mxu1 %v3938_v3 }
 0x1e5   :  { %4417 = vmatpush3.msra.mxu0 %v731_v2  ;;  %4436 = vmatpush3.msra.mxu1 %v3938_v3 }
 0x1e6   :  { %4418 = vmatprep.subr.mxu0 %v730_v4  ;;  %4437 = vmatprep.subr.mxu1 %v3937_v5 }
 0x1e7   :  { %4419 = vmatpush3.msra.mxu0 %v730_v4  ;;  %4438 = vmatpush3.msra.mxu1 %v3937_v5  ;;  %v1267_v5 = vld [vmem:[%s4984_s14] sm:$0xff] }
 0x1e8   :  { %4420 = vmatprep.subr.mxu0 %v729_v6  ;;  %4439 = vmatprep.subr.mxu1 %v3936_v7 }
 0x1e9   :  { %4421 = vmatpush3.msra.mxu0 %v729_v6  ;;  %4440 = vmatpush3.msra.mxu1 %v3936_v7  ;;  %v3968_v6 = vld [vmem:[%s4984_s14 + $0x8] sm:$0xff]  ;;  %v3978_v7 = vld [vmem:[%s4989_s19 + $0x78] sm:$0xff]  ;;  %s5534_s14 = sld [smem:[#allocation13_spill]] }
 0x1ea   :  { %4422 = vmatprep.subr.mxu0 %v728_v8  ;;  %4441 = vmatprep.subr.mxu1 %v3935_v9 }
 0x1eb   :  { %4423 = vmatpush3.msra.mxu0 %v728_v8  ;;  %4442 = vmatpush3.msra.mxu1 %v3935_v9  ;;  %v3977_v8 = vld [vmem:[%s4989_s19 + $0x70] sm:$0xff]  ;;  %v3976_v9 = vld [vmem:[%s4989_s19 + $0x68] sm:$0xff] }
 0x1ec   :  { %4424 = vmatprep.subr.mxu0 %v727_v10  ;;  %4443 = vmatprep.subr.mxu1 %v3934_v11 }
 0x1ed   :  { %4425 = vmatpush3.msra.mxu0 %v727_v10  ;;  %4444 = vmatpush3.msra.mxu1 %v3934_v11  ;;  %v3975_v10 = vld [vmem:[%s4989_s19 + $0x60] sm:$0xff]  ;;  %v1420_v11 = vld [vmem:[%s4989_s19 + $0x18] sm:$0xff] }
 0x1ee   :  { %4426 = vmatprep.subr.mxu0 %v726_v12  ;;  %4445 = vmatprep.subr.mxu1 %v3933_v13 }
 0x1ef   :  { %4427 = vmatpush3.msra.mxu0 %v726_v12  ;;  %4446 = vmatpush3.msra.mxu1 %v3933_v13  ;;  %v3974_v12 = vld [vmem:[%s4989_s19 + $0x58] sm:$0xff]  ;;  %v1419_v13 = vld [vmem:[%s4989_s19 + $0x10] sm:$0xff] }
 0x1f0   :  { %4465 = vmatprep.subr.bf16.mxu1 %v4926_v21 }
 0x29f   :  { %v4400_v14 = vpop.f32.mrf.mxu0  ;;  %v4411_v15 = vpop.f32.mrf.mxu1 }
 0x2a0   :  { %v725_v19 = vmax.f32 %v4400_v14, %v4411_v15  ;;  %v3973_v14 = vld [vmem:[%s4989_s19 + $0x50] sm:$0xff]  ;;  %v1418_v15 = vld [vmem:[%s4989_s19 + $0x8] sm:$0xff] }
 0x2a1   :  { %v631_v16 = vpop.f32.mrf.mxu0  ;;  %v715_v17 = vpop.f32.mrf.mxu1 }
 0x2a2   :  { %v724_v18 = vmax.f32 %v631_v16, %v715_v17  ;;  %v3972_v16 = vld [vmem:[%s4989_s19 + $0x48] sm:$0xff]  ;;  %v1417_v17 = vld [vmem:[%s4989_s19] sm:$0xff] }
 0x2a4   :  { %4428 = vmatprep.mubr.msk.f32.mxu0 %vm734_vm2, %v724_v18  ;;  %4447 = vmatprep.mubr.msk.f32.mxu1 %vm734_vm2, %v724_v18  ;;  %v3971_v18 = vld [vmem:[%s4989_s19 + $0x40] sm:$0xff]  ;;  %s5535_s19 = sld [smem:[#allocation16_spill]] }
 0x2a5   :  { %4429 = vmatmul.mubr.msk.f32.vlgmr.msra.gmra.mxu0 %vm734_vm2, %v725_v19  ;;  %4448 = vmatmul.mubr.msk.f32.vlgmr.msra.gmra.mxu1 %vm734_vm2, %v725_v19 }
 0x2a6   :  { %4454 = vmatprep.mubr.msk.f32.mxu0 %vm253_vm1, %v902_v20  ;;  %4469 = vmatprep.mubr.msk.bf16.mxu1 %vm4927_vm3, %v4926_v21 }
 0x2a7   :  { %4466 = vmatpush3.bf16.msra.mxu1 %v4839_v22 }
 0x2a8   :  { %4467 = vmatprep.subr.bf16.mxu1 %v4926_v21 }
 0x2ab   :  { %4468 = vmatpush3.bf16.msra.mxu1 %v4840_v35  ;;  %v4846_v35 = vld [vmem:[%s4999_s30 + $0x10] sm:$0xff]  }
 0x2ac   :  { %4480 = vmatprep.subr.bf16.mxu1 %v4926_v21 }
 0x365   :  { %v4430_v23 = vpop.f32.mrf.mxu0  ;;  %v4449_v24 = vpop.f32.mrf.mxu1 }
 0x366   :  { %v901_v25 = vmax.f32 %v4430_v23, %v4449_v24 }
 0x367   :  { %v807_v26 = vpop.f32.mrf.mxu0  ;;  %v891_v27 = vpop.f32.mrf.mxu1 }
 0x368   :  { %v900_v28 = vmax.f32 %v807_v26, %v891_v27  ;;  %4450 = vmatprep.subr.mxu0 %v901_v25 }
 0x369   :  { %4451 = vmatpush3.msra.mxu0 %v901_v25 }
 0x36a   :  { %4452 = vmatprep.subr.mxu0 %v900_v28  ;;  %v995_v32 = vpack.c.bf16 %v901_v25, %v900_v28 }
 0x36b   :  { %4453 = vmatpush3.msra.mxu0 %v900_v28 }
 0x36c   :  { %4455 = vmatmul.mubr.msk.f32.vlgmr.msra.gmra.mxu0 %vm253_vm1, %v903_v29  ;;  %4457 = vmatprep.subr.bf16.mxu0 %v4926_v21  ;;  %v1578_v29 = vld [vmem:[%s4994_s24] sm:$0x3] }
 0x36d   :  { %4458 = vmatpush3.bf16.msra.mxu0 %v4837_v30  ;;  %4461 = vmatprep.mubr.msk.bf16.mxu0 %vm4927_vm3, %v4926_v21 }
 0x36e   :  { %4459 = vmatprep.subr.bf16.mxu0 %v4926_v21 }
 0x371   :  { %4460 = vmatpush3.bf16.msra.mxu0 %v4838_v31 }
 0x372   :  { %4473 = vmatprep.subr.mxu0 %v901_v25 }
 0x374   :  { %4462 = vmatmul.mubr.msk.bf16.vlgmr.msra.gmra.mxu0 %vm140_vm0, %v995_v32  ;;  %v3981_v32 = vld [vmem:[%s4994_s24 + $0x2] sm:$0x3] }
 0x375   :  { %4474 = vmatpush3.msra.mxu0 %v901_v25  ;;  %4477 = vmatprep.mubr.msk.f32.mxu0 %vm253_vm1, %v3955_v33  ;;  %v4844_v25 = vld [vmem:[%s4999_s30 + $0x18] sm:$0xff]   ;;  %v4843_v33 = vld [vmem:[%s4999_s30 + $0x8] sm:$0xff]  }
 0x376   :  { %4475 = vmatprep.subr.mxu0 %v900_v28 }
 0x377   :  { %4476 = vmatpush3.msra.mxu0 %v900_v28 }
 0x378   :  { %4488 = vmatprep.subr.mxu0 %v4926_v21 }
 0x37c   :  { %4478 = vmatmul.mubr.msk.f32.vlgmr.msra.gmra.mxu0 %vm253_vm1, %v3956_v34  ;;  %v4845_v34 = vld [vmem:[%s4999_s30] sm:$0xff]  }
 0x37d   :  { %4492 = vmatprep.mubr.msk.f32.mxu0 %vm4927_vm3, %v4926_v21 }
 0x42c   :  { %v4456_v36 = vpop.f32.mrf.mxu0 }
 0x42e   :  { %v976_v37 = vpop.f32.mrf.mxu0 }
 0x42f   :  { %v989_v39 = vpack.c.bf16 %v4456_v36, %v976_v37 }
 0x431   :  { %4470 = vmatmul.mubr.msk.bf16.vlgmr.msra.gmra.mxu1 %vm140_vm0, %v989_v39 }
 0x432   :  { %4481 = vmatpush3.bf16.msra.mxu1 %v4841_v38  ;;  %4484 = vmatprep.mubr.msk.bf16.mxu1 %vm4927_vm3, %v4926_v21 }
 0x433   :  { %4482 = vmatprep.subr.bf16.mxu1 %v4926_v21 }
 0x434   :  { %v1045_v41 = vpop.f32.mrf.mxu0 }
 0x436   :  { %v4463_v42 = vpop.f32.mrf.mxu0  ;;  %4483 = vmatpush3.bf16.msra.mxu1 %v4842_v40 }
 0x437   :  { %4502 = vmatprep.subr.mxu1 %v4926_v21  ;;  %v3993_v42 = vld [vmem:[%s4994_s24 + $0x4] sm:$0x3] }
 0x438   :  { %v1048_v43 = vpop.f32.mrf.mxu0 }
 0x43a   :  { %v4464_v44 = vpop.f32.mrf.mxu0 }
 0x43b   :  { %v4847_v44 = vld [vmem:[%s4999_s30 + $0x28] sm:$0xff]  }
 0x43c   :  { %v4479_v45 = vpop.f32.mrf.mxu0 }
 0x43e   :  { %v1183_v46 = vpop.f32.mrf.mxu0 }
 0x43f   :  { %v1197_v47 = vpack.c.bf16 %v4479_v45, %v1183_v46  ;;  %v4848_v45 = vld [vmem:[%s4999_s30 + $0x20] sm:$0xff]  }
 0x441   :  { %4485 = vmatmul.mubr.msk.bf16.vlgmr.msra.gmra.mxu1 %vm140_vm0, %v1197_v47 }
 0x442   :  { %4518 = vmatprep.mubr.msk.f32.mxu1 %vm4927_vm3, %v4926_v21  ;;  %4503 = vmatpush3.msra.mxu1 %v1424_v48 }
 0x443   :  { %4504 = vmatprep.subr.mxu1 %v4926_v21 }
 0x444   :  { %4505 = vmatpush3.msra.mxu1 %v1423_v49 }
 0x445   :  { %4506 = vmatprep.subr.mxu1 %v4926_v21 }
 0x446   :  { %4507 = vmatpush3.msra.mxu1 %v1422_v50 }
 0x447   :  { %4508 = vmatprep.subr.mxu1 %v4926_v21 }
 0x448   :  { %4509 = vmatpush3.msra.mxu1 %v1421_v51 }
 0x449   :  { %4510 = vmatprep.subr.mxu1 %v4926_v21 }
 0x44a   :  { %4511 = vmatpush3.msra.mxu1 %v1420_v11 }
 0x44b   :  { %4512 = vmatprep.subr.mxu1 %v4926_v21 }
 0x44c   :  { %4513 = vmatpush3.msra.mxu1 %v1419_v13 }
 0x44d   :  { %4514 = vmatprep.subr.mxu1 %v4926_v21 }
 0x44e   :  { %4515 = vmatpush3.msra.mxu1 %v1418_v15  ;;  %v4853_v15 = vld [vmem:[%s5525_s5] sm:$0xff]  }
 0x44f   :  { %4516 = vmatprep.subr.mxu1 %v4926_v21 }
 0x450   :  { %4517 = vmatpush3.msra.mxu1 %v1417_v17 }
 0x451   :  { %4540 = vmatprep.subr.mxu1 %v4926_v21 }
 0x4f1   :  { %v1101_v52 = vpop.f32.mrf.mxu1 }
 0x4f2   :  { %v1102_v57 = vadd.f32 %v1101_v52, %v1045_v41 }
 0x4f3   :  { %v4471_v53 = vpop.f32.mrf.mxu1 }
 0x4f5   :  { %v1104_v54 = vpop.f32.mrf.mxu1 }
 0x4f6   :  { %v1105_v59 = vadd.f32 %v1104_v54, %v1048_v43  ;;  %v4002_v43 = vld [vmem:[%s4994_s24 + $0x6] sm:$0x3]  ;;  %s5536_s24 = sld [smem:[#allocation18_spill]] }
 0x4f7   :  { %v4472_v55 = vpop.f32.mrf.mxu1 }
 0x501   :  { %v1247_v56 = vpop.f32.mrf.mxu1 }
 0x502   :  { %v1254_v60 = vadd.f32 %v1247_v56, %v1102_v57  ;;  %v4849_v56 = vld [vmem:[%s4999_s30 + $0x38] sm:$0xff]  }
 0x503   :  { %v4486_v58 = vpop.f32.mrf.mxu1 }
 0x504   :  { %v1263_v1 = vadd.f32 %v3966_v61, %v1254_v60  ;;  %v4850_v60 = vld [vmem:[%s4999_s30 + $0x30] sm:$0xff]   ;;  %s5537_s30 = sld [smem:[#allocation17_spill]] }
 0x505   :  { %v1250_v62 = vpop.f32.mrf.mxu1 }
 0x506   :  { %v1255_v63 = vadd.f32 %v1250_v62, %v1105_v59  ;;  %v1265_v4 = vmax.f32 %v1263_v1, 0.0 }
 0x507   :  { %v4487_v0 = vpop.f32.mrf.mxu1 }
 0x508   :  { %v1264_v2 = vadd.f32 %v3966_v61, %v1255_v63  ;;  %v4851_v63 = vld [vmem:[%s5009_s12 + $0x8] sm:$0xff]   ;;  %v4852_v0 = vld [vmem:[%s5009_s12] sm:$0xff]  }
 0x50a   :  { %v1266_v3 = vmax.f32 %v1264_v2, 0.0 }
 0x50c   :  { %4489 = vmatpush3.msra.mxu0 %v1266_v3 }
 0x50d   :  { %4490 = vmatprep.subr.mxu0 %v4926_v21 }
 0x50e   :  { %4491 = vmatpush3.msra.mxu0 %v1265_v4 }
 0x50f   :  { %4493 = vmatmul.mubr.msk.f32.vlgmr.msra.gmra.mxu0 %vm253_vm1, %v1267_v5  ;;  %4495 = vmatprep.subr.mxu0 %v4926_v21 }
 0x510   :  { %4496 = vmatpush3.msra.mxu0 %v1266_v3  ;;  %4499 = vmatprep.mubr.msk.f32.mxu0 %vm4927_vm3, %v4926_v21 }
 0x511   :  { %4497 = vmatprep.subr.mxu0 %v4926_v21 }
 0x512   :  { %4498 = vmatpush3.msra.mxu0 %v1265_v4 }
 0x513   :  { %4500 = vmatmul.mubr.msk.f32.vlgmr.msra.gmra.mxu0 %vm253_vm1, %v3968_v6  ;;  %4521 = vmatprep.subr.mxu0 %v4926_v21 }
 0x514   :  { %4522 = vmatpush3.msra.mxu0 %v3978_v7  ;;  %4537 = vmatprep.mubr.msk.f32.mxu0 %vm4927_vm3, %v4926_v21  ;;  %v4011_v7 = vld [vmem:[%s5524_s0] ss:$0 sm:$0xff] }
 0x515   :  { %4523 = vmatprep.subr.mxu0 %v4926_v21 }
 0x516   :  { %4524 = vmatpush3.msra.mxu0 %v3977_v8 }
 0x517   :  { %4525 = vmatprep.subr.mxu0 %v4926_v21 }
 0x518   :  { %4526 = vmatpush3.msra.mxu0 %v3976_v9 }
 0x519   :  { %4527 = vmatprep.subr.mxu0 %v4926_v21 }
 0x51a   :  { %4528 = vmatpush3.msra.mxu0 %v3975_v10 }
 0x51b   :  { %4529 = vmatprep.subr.mxu0 %v4926_v21 }
 0x51c   :  { %4530 = vmatpush3.msra.mxu0 %v3974_v12 }
 0x51d   :  { %4531 = vmatprep.subr.mxu0 %v4926_v21 }
 0x51e   :  { %4532 = vmatpush3.msra.mxu0 %v3973_v14 }
 0x51f   :  { %4533 = vmatprep.subr.mxu0 %v4926_v21 }
 0x520   :  { %4534 = vmatpush3.msra.mxu0 %v3972_v16  ;;  %v4012_v16 = vld [vmem:[%s5526_s9] ss:$0 sm:$0xff] }
 0x521   :  { %4535 = vmatprep.subr.mxu0 %v4926_v21 }
 0x522   :  { %4536 = vmatpush3.msra.mxu0 %v3971_v18 }
 0x523   :  { %4550 = vmatprep.subr.bf16.mxu0 %v4926_v21 }
 0x5cf   :  { %v1337_v19 = vpop.f32.mrf.mxu0 }
 0x5d1   :  { %v4494_v20 = vpop.f32.mrf.mxu0 }
 0x5d3   :  { %v1412_v22 = vpop.f32.mrf.mxu0 }
 0x5d4   :  { %v1416_v23 = vmax.f32 %v1337_v19, %v1412_v22 }
 0x5d5   :  { %v4501_v24 = vpop.f32.mrf.mxu0 }
 0x5d6   :  { %4519 = vmatmul.mubr.msk.f32.vlgmr.msra.gmra.mxu1 %vm734_vm2, %v1416_v23  ;;  %4538 = vmatmul.mubr.msk.f32.vlgmr.msra.gmra.mxu0 %vm734_vm2, %v1416_v23 }
 0x5d7   :  { %4542 = vmatprep.mubr.msk.f32.mxu1 %vm4927_vm3, %v4926_v21  ;;  %4554 = vmatprep.mubr.msk.bf16.mxu0 %vm4927_vm3, %v4926_v21 }
 0x5d8   :  { %4551 = vmatpush3.bf16.msra.mxu0 %v4844_v25  ;;  %v2260_v25 = vld [vmem:[%s5527_s13] sm:$0xf] }
 0x5d9   :  { %4552 = vmatprep.subr.bf16.mxu0 %v4926_v21 }
 0x5dc   :  { %4553 = vmatpush3.bf16.msra.mxu0 %v4846_v35  ;;  %v4854_v35 = vld [vmem:[%s5529_s21] sm:$0xff]  }
 0x5dd   :  { %4566 = vmatprep.subr.mxu0 %v4926_v21 }
 0x696   :  { %v1494_v26 = vpop.f32.mrf.mxu1  ;;  %v1573_v27 = vpop.f32.mrf.mxu0 }
 0x697   :  { %v1577_v28 = vmax.f32 %v1494_v26, %v1573_v27  ;;  %v2274_v26 = vsel %vm2272_vm5, %v2260_v25, 0  ;;  %v4016_v27 = vld [vmem:[%s5528_s17] ss:$0 sm:$0xff] }
 0x698   :  { %v4520_v30 = vpop.f32.mrf.mxu1  ;;  %v4539_v31 = vpop.f32.mrf.mxu0 }
 0x699   :  { %4541 = vmatpush3.msra.mxu1 %v1577_v28 }
 0x69a   :  { %4543 = vmatmul.mubr.msk.f32.vlgmr.msra.gmra.mxu1 %vm1579_vm4, %v1578_v29  ;;  %4545 = vmatprep.subr.mxu1 %v4926_v21 }
 0x69b   :  { %4546 = vmatpush3.msra.mxu1 %v1577_v28  ;;  %4547 = vmatprep.mubr.msk.f32.mxu1 %vm4927_vm3, %v4926_v21 }
 0x69c   :  { %4558 = vmatprep.subr.bf16.mxu1 %v4926_v21 }
 0x69e   :  { %4548 = vmatmul.mubr.msk.f32.vlgmr.msra.gmra.mxu1 %vm1579_vm4, %v3981_v32 }
 0x69f   :  { %4559 = vmatpush3.bf16.msra.mxu1 %v4843_v33  ;;  %4562 = vmatprep.mubr.msk.bf16.mxu1 %vm4927_vm3, %v4926_v21 }
 0x6a0   :  { %4560 = vmatprep.subr.bf16.mxu1 %v4926_v21 }
 0x6a3   :  { %4561 = vmatpush3.bf16.msra.mxu1 %v4845_v34 }
 0x6a4   :  { %4571 = vmatprep.subr.bf16.mxu1 %v4926_v21 }
 0x75a   :  { %v1649_v36 = vpop.f32.mrf.mxu1 }
 0x75b   :  { %v1657_v37 = vpack.c.bf16 %v1649_v36, %v1649_v36  ;;  %v4019_v36 = vld [vmem:[%s5530_s25] ss:$0 sm:$0xff] }
 0x75c   :  { %v4544_v38 = vpop.f32.mrf.mxu1 }
 0x75d   :  { %4563 = vmatmul.mubr.msk.bf16.vlgmr.msra.gmra.mxu1 %vm140_vm0, %v1657_v37 }
 0x75e   :  { %v1729_v39 = vpop.f32.mrf.mxu1  ;;  %4575 = vmatprep.mubr.msk.bf16.mxu1 %vm4927_vm3, %v4926_v21  ;;  %4572 = vmatpush3.bf16.msra.mxu1 %v4847_v44  ;;  %v4855_v44 = vld [vmem:[%s5531_s29 + $0x8] sm:$0xff]  }
 0x75f   :  { %v1738_v40 = vpack.c.bf16 %v1729_v39, %v1729_v39  ;;  %4573 = vmatprep.subr.bf16.mxu1 %v4926_v21 }
 0x760   :  { %v4549_v41 = vpop.f32.mrf.mxu1 }
 0x761   :  { %4555 = vmatmul.mubr.msk.bf16.vlgmr.msra.gmra.mxu0 %vm140_vm0, %v1738_v40 }
 0x762   :  { %4567 = vmatpush3.msra.mxu0 %v1577_v28  ;;  %4568 = vmatprep.mubr.msk.f32.mxu0 %vm4927_vm3, %v4926_v21 }
 0x763   :  { %4579 = vmatprep.subr.mxu0 %v4926_v21  ;;  %4574 = vmatpush3.bf16.msra.mxu1 %v4848_v45  ;;  %v4856_v45 = vld [vmem:[%s5531_s29 + $0x18] sm:$0xff]  }
 0x764   :  { %4584 = vmatprep.subr.bf16.mxu1 %v4926_v21 }
 0x769   :  { %4569 = vmatmul.mubr.msk.f32.vlgmr.msra.gmra.mxu0 %vm1579_vm4, %v3993_v42 }
 0x76a   :  { %4580 = vmatpush3.msra.mxu0 %v1577_v28  ;;  %4581 = vmatprep.mubr.msk.f32.mxu0 %vm4927_vm3, %v4926_v21 }
 0x76b   :  { %4592 = vmatprep.subr.bf16.mxu0 %v4926_v21 }
 0x76d   :  { %4582 = vmatmul.mubr.msk.f32.vlgmr.msra.gmra.mxu0 %vm1579_vm4, %v4002_v43 }
 0x76e   :  { %4596 = vmatprep.mubr.msk.bf16.mxu0 %vm4927_vm3, %v4926_v21  ;;  %4593 = vmatpush3.bf16.msra.mxu0 %v4851_v63 }
 0x76f   :  { %4594 = vmatprep.subr.bf16.mxu0 %v4926_v21 }
 0x772   :  { %4595 = vmatpush3.bf16.msra.mxu0 %v4852_v0 }
 0x773   :  { %4606 = vmatprep.subr.bf16.mxu0 %v4926_v21 }
 0x81d   :  { %v1843_v46 = vpop.f32.mrf.mxu1 }
 0x81f   :  { %v4564_v47 = vpop.f32.mrf.mxu1 }
 0x820   :  { %v4858_v47 = vld [vmem:[%s5531_s29 + $0x10] sm:$0xff]  }
 0x821   :  { %v1788_v48 = vpop.f32.mrf.mxu0  ;;  %v1846_v49 = vpop.f32.mrf.mxu1 }
 0x822   :  { %v1844_v50 = vadd.f32 %v1843_v46, %v1788_v48  ;;  %v4857_v46 = vld [vmem:[%s5531_s29] sm:$0xff]  }
 0x823   :  { %v4556_v51 = vpop.f32.mrf.mxu0  ;;  %v4565_v52 = vpop.f32.mrf.mxu1  ;;  %v4021_v48 = vld [vmem:[%s5532_s3] ss:$0 sm:$0xff] }
 0x825   :  { %v1791_v53 = vpop.f32.mrf.mxu0 }
 0x827   :  { %v4557_v54 = vpop.f32.mrf.mxu0 }
 0x828   :  { %v4859_v54 = vld [vmem:[%s5531_s29 + $0x28] sm:$0xff]  }
 0x829   :  { %v1920_v55 = vpop.f32.mrf.mxu0 }
 0x82a   :  { %v1929_v57 = vpack.c.bf16 %v1920_v55, %v1920_v55 }
 0x82b   :  { %v4570_v58 = vpop.f32.mrf.mxu0 }
 0x82c   :  { %4576 = vmatmul.mubr.msk.bf16.vlgmr.msra.gmra.mxu1 %vm140_vm0, %v1929_v57  ;;  %v4860_v57 = vld [vmem:[%s5531_s29 + $0x20] sm:$0xff]   ;;  %v4861_v58 = vld [vmem:[%s5531_s29 + $0x38] sm:$0xff]  }
 0x82d   :  { %4585 = vmatpush3.bf16.msra.mxu1 %v4849_v56  ;;  %v2057_v59 = vpop.f32.mrf.mxu0  ;;  %4588 = vmatprep.mubr.msk.bf16.mxu1 %vm4927_vm3, %v4926_v21 }
 0x82e   :  { %4586 = vmatprep.subr.bf16.mxu1 %v4926_v21  ;;  %v2066_v62 = vpack.c.bf16 %v2057_v59, %v2057_v59  ;;  %v4862_v59 = vld [vmem:[%s5531_s29 + $0x30] sm:$0xff]  }
 0x82f   :  { %v4583_v61 = vpop.f32.mrf.mxu0 }
 0x830   :  { %v4034_v61 = vld [vmem:[%s5533_s8 + $0x1] ss:$0 sm:$0xff] }
 0x831   :  { %4587 = vmatpush3.bf16.msra.mxu1 %v4850_v60  ;;  %v4024_v60 = vld [vmem:[%s5533_s8] ss:$0 sm:$0xff] }
 0x832   :  { %4600 = vmatprep.subr.bf16.mxu1 %v4926_v21 }
 0x834   :  { %4589 = vmatmul.mubr.msk.bf16.vlgmr.msra.gmra.mxu1 %vm140_vm0, %v2066_v62 }
 0x835   :  { %4602 = vmatprep.mubr.msk.bf16.mxu1 %vm4927_vm3, %v4926_v21  ;;  %4601 = vmatpush3.bf16.msra.mxu1 %v4853_v15 }
 0x836   :  { %4612 = vmatprep.subr.bf16.mxu1 %v4926_v21 }
 0x8ec   :  { %v1979_v1 = vpop.f32.mrf.mxu1 }
 0x8ed   :  { %v1985_v5 = vadd.f32 %v1979_v1, %v1844_v50 }
 0x8ee   :  { %v4577_v2 = vpop.f32.mrf.mxu1 }
 0x8f0   :  { %v1982_v3 = vpop.f32.mrf.mxu1 }
 0x8f2   :  { %v4578_v4 = vpop.f32.mrf.mxu1 }
 0x8f4   :  { %v2116_v6 = vpop.f32.mrf.mxu1 }
 0x8f5   :  { %v2122_v8 = vadd.f32 %v2116_v6, %v1985_v5  ;;  %v4028_v5 = vld [vmem:[%s5534_s14 + $0x8] sm:$0xff] }
 0x8f6   :  { %v4590_v9 = vpop.f32.mrf.mxu1 }
 0x8f7   :  { %v2130_v10 = vadd.f32 %v4011_v7, %v2122_v8 }
 0x8f8   :  { %v2119_v11 = vpop.f32.mrf.mxu1 }
 0x8f9   :  { %v2131_v12 = vmax.f32 %v2130_v10, 0.0  ;;  %v4048_v11 = vld [vmem:[%s5533_s8 + $0x2] ss:$0 sm:$0xff] }
 0x8fa   :  { %v4591_v13 = vpop.f32.mrf.mxu1 }
 0x8fb   :  { %v2136_v14 = vpack.c.bf16 %v2131_v12, %v2131_v12  ;;  %v2377_v12 = vld [vmem:[%s5534_s14] sm:$0xff] }
 0x8fd   :  { %4597 = vmatmul.mubr.msk.bf16.vlgmr.msra.gmra.mxu0 %vm140_vm0, %v2136_v14 }
 0x8fe   :  { %4608 = vmatprep.mubr.msk.bf16.mxu0 %vm4927_vm3, %v4926_v21  ;;  %4607 = vmatpush3.bf16.msra.mxu0 %v2274_v26  ;;  %v4054_v26 = vld [vmem:[%s5534_s14 + $0x18] sm:$0xff] }
 0x8ff   :  { %4618 = vmatprep.subr.bf16.mxu0 %v4926_v21 }
 0x9bd   :  { %v2193_v17 = vpop.f32.mrf.mxu0 }
 0x9be   :  { %v2194_v18 = vadd.f32 %v4012_v16, %v2193_v17  ;;  %v4042_v17 = vld [vmem:[%s5534_s14 + $0x10] sm:$0xff] }
 0x9bf   :  { %v4598_v19 = vpop.f32.mrf.mxu0 }
 0x9c0   :  { %v2199_v20 = vmax.f32 %v2194_v18, 0.0 }
 0x9c1   :  { %v2196_v22 = vpop.f32.mrf.mxu0 }
 0x9c2   :  { %v2202_v23 = vpack.c.bf16 %v2199_v20, %v2199_v20  ;;  %v4060_v20 = vld [vmem:[%s5533_s8 + $0x3] ss:$0 sm:$0xff] }
 0x9c3   :  { %v4599_v24 = vpop.f32.mrf.mxu0 }
 0x9c4   :  { %4603 = vmatmul.mubr.msk.bf16.vlgmr.msra.gmra.mxu1 %vm253_vm1, %v2202_v23 }
 0x9c5   :  { %4614 = vmatprep.mubr.msk.bf16.mxu1 %vm4927_vm3, %v4926_v21  ;;  %4613 = vmatpush3.bf16.msra.mxu1 %v4854_v35 }
 0x9c6   :  { %4626 = vmatprep.subr.bf16.mxu1 %v4926_v21 }
 0xa84   :  { %v2253_v28 = vpop.f32.mrf.mxu1 }
 0xa85   :  { %v2254_v29 = vadd.f32 %v4016_v27, %v2253_v28 }
 0xa86   :  { %v4604_v30 = vpop.f32.mrf.mxu1 }
 0xa87   :  { %v2259_v31 = vmax.f32 %v2254_v29, 0.0  ;;  %v4863_v29 = vld [vmem:[%s5535_s19 + $0x8] sm:$0xff]   ;;  %v4864_v30 = vld [vmem:[%s5535_s19] sm:$0xff]  }
 0xa88   :  { %v2256_v32 = vpop.f32.mrf.mxu1 }
 0xa89   :  { %v2261_v33 = vpack.c.bf16 %v2259_v31, %v2259_v31  ;;  %v4865_v31 = vld [vmem:[%s5536_s24 + $0x18] sm:$0xff]   ;;  %v4866_v32 = vld [vmem:[%s5536_s24 + $0x10] sm:$0xff]  }
 0xa8a   :  { %v4605_v34 = vpop.f32.mrf.mxu1 }
 0xa8b   :  { %4609 = vmatmul.mubr.msk.bf16.vlgmr.msra.gmra.mxu0 %vm1579_vm4, %v2261_v33 }
 0xa8c   :  { %4622 = vmatprep.mubr.msk.bf16.mxu0 %vm4927_vm3, %v4926_v21  ;;  %4619 = vmatpush3.bf16.msra.mxu0 %v4855_v44 }
 0xa8d   :  { %4620 = vmatprep.subr.bf16.mxu0 %v4926_v21 }
 0xa90   :  { %4621 = vmatpush3.bf16.msra.mxu0 %v4857_v46  ;;  %v4868_v46 = vld [vmem:[%s5536_s24] sm:$0xff]  }
 0xa91   :  { %4634 = vmatprep.subr.mxu0 %v4926_v21 }
 0xb4b   :  { %v2310_v37 = vpop.f32.mrf.mxu0 }
 0xb4c   :  { %v2311_v38 = vadd.f32 %v4019_v36, %v2310_v37 }
 0xb4d   :  { %v4610_v39 = vpop.f32.mrf.mxu0 }
 0xb4e   :  { %v2316_v40 = vmax.f32 %v2311_v38, 0.0 }
 0xb4f   :  { %v2313_v41 = vpop.f32.mrf.mxu0 }
 0xb50   :  { %v2319_v42 = vpack.c.bf16 %v2316_v40, %v2316_v40 }
 0xb51   :  { %v4611_v43 = vpop.f32.mrf.mxu0 }
 0xb52   :  { %4615 = vmatmul.mubr.msk.bf16.vlgmr.msra.gmra.mxu1 %vm253_vm1, %v2319_v42 }
 0xb53   :  { %4630 = vmatprep.mubr.msk.bf16.mxu1 %vm4927_vm3, %v4926_v21  ;;  %4627 = vmatpush3.bf16.msra.mxu1 %v4856_v45  ;;  %v4867_v45 = vld [vmem:[%s5536_s24 + $0x8] sm:$0xff]  }
 0xb54   :  { %4628 = vmatprep.subr.bf16.mxu1 %v4926_v21 }
 0xb57   :  { %4629 = vmatpush3.bf16.msra.mxu1 %v4858_v47  ;;  %v4066_v47 = vld [vmem:[%s5537_s30] ss:$0 sm:$0xff] }
 0xb58   :  { %4644 = vmatprep.subr.bf16.mxu1 %v4926_v21 }
 0xc12   :  { %v2370_v49 = vpop.f32.mrf.mxu1 }
 0xc13   :  { %v2371_v50 = vadd.f32 %v4021_v48, %v2370_v49 }
 0xc14   :  { %v4616_v51 = vpop.f32.mrf.mxu1 }
 0xc15   :  { %v2376_v52 = vmax.f32 %v2371_v50, 0.0 }
 0xc16   :  { %v2373_v53 = vpop.f32.mrf.mxu1 }
 0xc17   :  { %v2382_v55 = vpack.c.bf16 %v2376_v52, %v2376_v52 }
 0xc18   :  { %v4617_v56 = vpop.f32.mrf.mxu1 }
 0xc19   :  { %4623 = vmatmul.mubr.msk.bf16.vlgmr.msra.gmra.mxu0 %vm140_vm0, %v2382_v55  ;;  %4631 = vmatmul.mubr.msk.bf16.vlgmr.msra.gmra.mxu1 %vm140_vm0, %v2382_v55  ;;  %v3126_v56 = vld [vmem:[%s5089_s6 + $0x38] sm:$0xff] }
 0xc1a   :  { %4645 = vmatpush3.bf16.msra.mxu1 %v4859_v54  ;;  %4648 = vmatprep.mubr.msk.bf16.mxu1 %vm4927_vm3, %v4926_v21 }
 0xc1b   :  { %4646 = vmatprep.subr.bf16.mxu1 %v4926_v21  ;;  %4636 = vmatprep.mubr.msk.f32.mxu0 %vm4927_vm3, %v4926_v21 }
 0xc1e   :  { %4647 = vmatpush3.bf16.msra.mxu1 %v4860_v57  ;;  %v4088_v57 = vld [vmem:[%s5089_s6 + $0x70] sm:$0xff] }
 0xc1f   :  { %4657 = vmatprep.subr.bf16.mxu1 %v4926_v21 }
 0xc21   :  { %4649 = vmatmul.mubr.msk.bf16.vlgmr.msra.gmra.mxu1 %vm140_vm0, %v2382_v55 }
 0xc22   :  { %4658 = vmatpush3.bf16.msra.mxu1 %v4861_v58  ;;  %4661 = vmatprep.mubr.msk.bf16.mxu1 %vm4927_vm3, %v4926_v21  ;;  %v3125_v58 = vld [vmem:[%s5089_s6 + $0x30] sm:$0xff] }
 0xc23   :  { %4659 = vmatprep.subr.bf16.mxu1 %v4926_v21 }
 0xc26   :  { %4660 = vmatpush3.bf16.msra.mxu1 %v4862_v59  ;;  %v4087_v59 = vld [vmem:[%s5089_s6 + $0x68] sm:$0xff] }
 0xc27   :  { %4678 = vmatprep.subr.bf16.mxu1 %v4926_v21 }
 0xc29   :  { %4662 = vmatmul.mubr.msk.bf16.vlgmr.msra.gmra.mxu1 %vm140_vm0, %v2382_v55  ;;  %v4089_v55 = vld [vmem:[%s5089_s6 + $0x78] sm:$0xff] }
 0xc2a   :  { %4686 = vmatprep.mubr.msk.bf16.mxu1 %vm4927_vm3, %v4926_v21  ;;  %4679 = vmatpush3.bf16.msra.mxu1 %v4865_v31 }
 0xc2b   :  { %4680 = vmatprep.subr.bf16.mxu1 %v4926_v21 }
 0xc2e   :  { %4681 = vmatpush3.bf16.msra.mxu1 %v4866_v32 }
 0xc2f   :  { %4682 = vmatprep.subr.bf16.mxu1 %v4926_v21 }
 0xc32   :  { %4683 = vmatpush3.bf16.msra.mxu1 %v4867_v45  ;;  %v4102_v45 = vld [vmem:[%s5084_s4 + $0x58] sm:$0xff] }
 0xc33   :  { %4684 = vmatprep.subr.bf16.mxu1 %v4926_v21 }
 0xc36   :  { %4685 = vmatpush3.bf16.msra.mxu1 %v4868_v46  ;;  %v4125_v46 = vld [vmem:[%s5089_s6 + $0xe8] sm:$0xff] }
 0xc37   :  { %4709 = vmatprep.subr.mxu1 %v4926_v21 }
 0xcd9   :  { %v2439_v62 = vpop.f32.mrf.mxu0  ;;  %v2507_v63 = vpop.f32.mrf.mxu1 }
 0xcda   :  { %v2440_v0 = vadd.f32 %v4024_v60, %v2439_v62  ;;  %v2508_v1 = vadd.f32 %v4034_v61, %v2507_v63  ;;  %v3124_v60 = vld [vmem:[%s5089_s6 + $0x28] sm:$0xff]  ;;  %v4086_v61 = vld [vmem:[%s5089_s6 + $0x60] sm:$0xff]  ;;  %v4085_v63 = vld [vmem:[%s5089_s6 + $0x58] sm:$0xff] }
 0xcdb   :  { %v4624_v2 = vpop.f32.mrf.mxu0  ;;  %v4632_v3 = vpop.f32.mrf.mxu1  ;;  %v3123_v62 = vld [vmem:[%s5089_s6 + $0x20] sm:$0xff] }
 0xcdc   :  { %v2513_v4 = vmax.f32 %v2508_v1, 0.0  ;;  %v2445_v8 = vmax.f32 %v2440_v0, 0.0  ;;  %v3122_v0 = vld [vmem:[%s5089_s6 + $0x18] sm:$0xff]  ;;  %v4084_v1 = vld [vmem:[%s5089_s6 + $0x50] sm:$0xff]  ;;  %v4083_v3 = vld [vmem:[%s5089_s6 + $0x48] sm:$0xff] }
 0xcdd   :  { %v2442_v6 = vpop.f32.mrf.mxu0  ;;  %v2510_v7 = vpop.f32.mrf.mxu1  ;;  %v3121_v2 = vld [vmem:[%s5089_s6 + $0x10] sm:$0xff] }
 0xcde   :  { %4635 = vmatpush3.msk.msra.mxu0 %vm2518_vm6, %v2513_v4  ;;  %v3120_v4 = vld [vmem:[%s5089_s6 + $0x8] sm:$0xff]  ;;  %v3119_v6 = vld [vmem:[%s5089_s6] sm:$0xff] }
 0xcdf   :  { %v4625_v9 = vpop.f32.mrf.mxu0  ;;  %v4633_v10 = vpop.f32.mrf.mxu1  ;;  %4637 = vmatmul.mubr.msk.f32.vlgmr.msra.gmra.mxu0 %vm2514_vm7, %v4028_v5  ;;  %4639 = vmatprep.subr.mxu0 %v4926_v21  ;;  %v4082_v5 = vld [vmem:[%s5089_s6 + $0x40] sm:$0xff] }
 0xce0   :  { %4640 = vmatpush3.msk.msra.mxu0 %vm2518_vm6, %v2445_v8  ;;  %4641 = vmatprep.mubr.msk.f32.mxu0 %vm4927_vm3, %v4926_v21  ;;  %v4070_v7 = vld [vmem:[%s5079_s27] ss:$0 sm:$0xff] }
 0xce1   :  { %v2729_v13 = vpop.f32.mrf.mxu1  ;;  %4652 = vmatprep.subr.mxu0 %v4926_v21 }
 0xce2   :  { %v2730_v14 = vadd.f32 %v4048_v11, %v2729_v13 }
 0xce3   :  { %4642 = vmatmul.mubr.msk.f32.vlgmr.msra.gmra.mxu0 %vm2514_vm7, %v2377_v12  ;;  %v4650_v15 = vpop.f32.mrf.mxu1 }
 0xce4   :  { %v2735_v16 = vmax.f32 %v2730_v14, 0.0  ;;  %4654 = vmatprep.mubr.msk.f32.mxu0 %vm4927_vm3, %v4926_v21 }
 0xce5   :  { %v2732_v18 = vpop.f32.mrf.mxu1 }
 0xce6   :  { %4653 = vmatpush3.msk.msra.mxu0 %vm2518_vm6, %v2735_v16  ;;  %v4110_v16 = vld [vmem:[%s5089_s6 + $0xb8] sm:$0xff]  ;;  %v4109_v18 = vld [vmem:[%s5089_s6 + $0xb0] sm:$0xff] }
 0xce7   :  { %v4651_v19 = vpop.f32.mrf.mxu1  ;;  %4655 = vmatmul.mubr.msk.f32.vlgmr.msra.gmra.mxu0 %vm2514_vm7, %v4042_v17  ;;  %4665 = vmatprep.subr.mxu0 %v4926_v21 }
 0xce8   :  { %4667 = vmatprep.mubr.msk.f32.mxu0 %vm4927_vm3, %v4926_v21  ;;  %v4108_v19 = vld [vmem:[%s5089_s6 + $0xa8] sm:$0xff] }
 0xce9   :  { %v2874_v22 = vpop.f32.mrf.mxu1 }
 0xcea   :  { %v2875_v23 = vadd.f32 %v4060_v20, %v2874_v22  ;;  %v4107_v20 = vld [vmem:[%s5089_s6 + $0xa0] sm:$0xff]  ;;  %v4106_v22 = vld [vmem:[%s5089_s6 + $0x98] sm:$0xff] }
 0xceb   :  { %v4663_v24 = vpop.f32.mrf.mxu1 }
 0xcec   :  { %v2880_v25 = vmax.f32 %v2875_v23, 0.0  ;;  %v4105_v23 = vld [vmem:[%s5089_s6 + $0x90] sm:$0xff]  ;;  %v4104_v24 = vld [vmem:[%s5089_s6 + $0x88] sm:$0xff] }
 0xced   :  { %v2877_v27 = vpop.f32.mrf.mxu1 }
 0xcee   :  { %4666 = vmatpush3.msk.msra.mxu0 %vm2518_vm6, %v2880_v25  ;;  %v4103_v25 = vld [vmem:[%s5089_s6 + $0x80] sm:$0xff] }
 0xcef   :  { %v4664_v28 = vpop.f32.mrf.mxu1  ;;  %4668 = vmatmul.mubr.msk.f32.vlgmr.msra.gmra.mxu0 %vm2514_vm7, %v4054_v26  ;;  %4670 = vmatprep.subr.bf16.mxu0 %v4926_v21  ;;  %v4078_v26 = vld [vmem:[%s5084_s4 + $0x20] sm:$0xff] }
 0xcf0   :  { %4674 = vmatprep.mubr.msk.bf16.mxu0 %vm4927_vm3, %v4926_v21  ;;  %4671 = vmatpush3.bf16.msra.mxu0 %v4863_v29  ;;  %v4079_v29 = vld [vmem:[%s5084_s4 + $0x28] sm:$0xff] }
 0xcf1   :  { %4672 = vmatprep.subr.bf16.mxu0 %v4926_v21 }
 0xcf4   :  { %4673 = vmatpush3.bf16.msra.mxu0 %v4864_v30  ;;  %v4080_v30 = vld [vmem:[%s5084_s4 + $0x30] sm:$0xff] }
 0xcf5   :  { %4690 = vmatprep.subr.mxu0 %v4926_v21 }
 0xd9f   :  { %v2588_v33 = vpop.f32.mrf.mxu0 }
 0xda1   :  { %v4638_v34 = vpop.f32.mrf.mxu0 }
 0xda2   :  { %v3115_v34 = vld [vmem:[%s5084_s4] sm:$0xff] }
 0xda3   :  { %v2664_v35 = vpop.f32.mrf.mxu0 }
 0xda4   :  { %v2665_v39 = vadd.f32 %v2664_v35, %v2588_v33  ;;  %v4081_v33 = vld [vmem:[%s5084_s4 + $0x38] sm:$0xff]  ;;  %v3116_v35 = vld [vmem:[%s5084_s4 + $0x8] sm:$0xff] }
 0xda5   :  { %v4643_v36 = vpop.f32.mrf.mxu0 }
 0xda6   :  { %v3117_v36 = vld [vmem:[%s5084_s4 + $0x10] sm:$0xff] }
 0xda7   :  { %v2808_v37 = vpop.f32.mrf.mxu0 }
 0xda8   :  { %v2812_v40 = vadd.f32 %v2808_v37, %v2665_v39  ;;  %v3118_v37 = vld [vmem:[%s5084_s4 + $0x18] sm:$0xff] }
 0xda9   :  { %v4656_v38 = vpop.f32.mrf.mxu0 }
 0xdaa   :  { %v4099_v38 = vld [vmem:[%s5084_s4 + $0x40] sm:$0xff] }
 0xdaf   :  { %v2953_v41 = vpop.f32.mrf.mxu0 }
 0xdb0   :  { %v2957_v42 = vadd.f32 %v2953_v41, %v2812_v40  ;;  %v4100_v40 = vld [vmem:[%s5084_s4 + $0x48] sm:$0xff]  ;;  %v4127_v41 = vld [vmem:[%s5089_s6 + $0xf8] sm:$0xff] }
 0xdb1   :  { %v4669_v43 = vpop.f32.mrf.mxu0 }
 0xdb2   :  { %v2962_v44 = vpack.c.bf16 %v2957_v42, %v2957_v42  ;;  %v4101_v42 = vld [vmem:[%s5084_s4 + $0x50] sm:$0xff] }
 0xdb4   :  { %4675 = vmatmul.mubr.msk.bf16.vlgmr.msra.gmra.mxu0 %vm140_vm0, %v2962_v44  ;;  %v4126_v44 = vld [vmem:[%s5089_s6 + $0xf0] sm:$0xff] }
 0xdb5   :  { %4706 = vmatprep.mubr.msk.f32.mxu0 %vm4927_vm3, %v4926_v21  ;;  %4691 = vmatpush3.msra.mxu0 %v3126_v56 }
 0xdb6   :  { %4692 = vmatprep.subr.mxu0 %v4926_v21 }
 0xdb7   :  { %4693 = vmatpush3.msra.mxu0 %v3125_v58 }
 0xdb8   :  { %4694 = vmatprep.subr.mxu0 %v4926_v21 }
 0xdb9   :  { %4695 = vmatpush3.msra.mxu0 %v3124_v60 }
 0xdba   :  { %4696 = vmatprep.subr.mxu0 %v4926_v21 }
 0xdbb   :  { %4697 = vmatpush3.msra.mxu0 %v3123_v62 }
 0xdbc   :  { %4698 = vmatprep.subr.mxu0 %v4926_v21 }
 0xdbd   :  { %4699 = vmatpush3.msra.mxu0 %v3122_v0 }
 0xdbe   :  { %4700 = vmatprep.subr.mxu0 %v4926_v21 }
 0xdbf   :  { %4701 = vmatpush3.msra.mxu0 %v3121_v2 }
 0xdc0   :  { %4702 = vmatprep.subr.mxu0 %v4926_v21 }
 0xdc1   :  { %4703 = vmatpush3.msra.mxu0 %v3120_v4 }
 0xdc2   :  { %4704 = vmatprep.subr.mxu0 %v4926_v21 }
 0xdc3   :  { %4705 = vmatpush3.msra.mxu0 %v3119_v6 }
 0xe74   :  { %v3019_v48 = vpop.f32.mrf.mxu0 }
 0xe75   :  { %v3020_v49 = vadd.f32 %v4066_v47, %v3019_v48  ;;  %v4124_v47 = vld [vmem:[%s5089_s6 + $0xe0] sm:$0xff]  ;;  %v4123_v48 = vld [vmem:[%s5089_s6 + $0xd8] sm:$0xff] }
 0xe76   :  { %v4676_v50 = vpop.f32.mrf.mxu0 }
 0xe77   :  { %v3025_v51 = vmax.f32 %v3020_v49, 0.0  ;;  %v4122_v49 = vld [vmem:[%s5089_s6 + $0xd0] sm:$0xff]  ;;  %v4121_v50 = vld [vmem:[%s5089_s6 + $0xc8] sm:$0xff] }
 0xe78   :  { %v3022_v52 = vpop.f32.mrf.mxu0 }
 0xe79   :  { %v3034_v53 = vpack.c.bf16 %v3025_v51, %v3025_v51  ;;  %v4120_v51 = vld [vmem:[%s5089_s6 + $0xc0] sm:$0xff]  ;;  %s4928_s6 = smov [#allocation2]  }
 0xe7a   :  { %v4677_v54 = vpop.f32.mrf.mxu0  ;;  %v4116_v52 = vld [vmem:[%s5084_s4 + $0x60] sm:$0xff]  ;;  %s3857_s12 = sshll.u32 %s4928_s6, 4  ;;  %s3858_s12 = int_to_ptr.vmem [resolvable:$true] %s3857_s12 }
 0xe7b   :  { %4687 = vmatmul.mubr.msk.bf16.vlgmr.msra.gmra.mxu1 %vm734_vm2, %v3034_v53  ;;  %s4873_s27 = scalar_lea.vmem %s3858_s12, 512  ;;  %p4878_p1 = scmp.lt.s32.totalorder %s3858_s12, %s3858_s12 }
 0xe7c   :  { %4725 = vmatprep.mubr.msk.f32.mxu1 %vm4927_vm3, %v4926_v21  ;;  %4710 = vmatpush3.msra.mxu1 %v4089_v55  ;;  %p4874_p0 = scmp.ne.s32.totalorder %s3858_s12, %s4873_s27  ;;  %p4879_p2 = scmp.lt.s32.totalorder %s4873_s27, %s4873_s27 }
 0xe7d   :  { %4711 = vmatprep.subr.mxu1 %v4926_v21 }
 0xe7e   :  { %4712 = vmatpush3.msra.mxu1 %v4088_v57  ;;  %p4880_p3 = por %p4879_p2, %p4878_p1 }
 0xe7f   :  { %4713 = vmatprep.subr.mxu1 %v4926_v21 }
 0xe80   :  { %4714 = vmatpush3.msra.mxu1 %v4087_v59  ;;  %p4881_p4 = pnand %p4880_p3, %p4874_p0 }
 0xe81   :  { %4715 = vmatprep.subr.mxu1 %v4926_v21 }
 0xe82   :  { %4716 = vmatpush3.msra.mxu1 %v4086_v61 }
 0xe83   :  { %4717 = vmatprep.subr.mxu1 %v4926_v21 }
 0xe84   :  { %4718 = vmatpush3.msra.mxu1 %v4085_v63 }
 0xe85   :  { %4719 = vmatprep.subr.mxu1 %v4926_v21 }
 0xe86   :  { %4720 = vmatpush3.msra.mxu1 %v4084_v1 }
 0xe87   :  { %4721 = vmatprep.subr.mxu1 %v4926_v21 }
 0xe88   :  { %4722 = vmatpush3.msra.mxu1 %v4083_v3 }
 0xe89   :  { %4723 = vmatprep.subr.mxu1 %v4926_v21 }
 0xe8a   :  { %4724 = vmatpush3.msra.mxu1 %v4082_v5 }
 0xe8b   :  { %4744 = vmatprep.subr.mxu1 %v4926_v21 }
 0xf3b   :  { %v3103_v8 = vpop.f32.mrf.mxu1 }
 0xf3c   :  { %v3104_v9 = vadd.f32 %v4070_v7, %v3103_v8 }
 0xf3d   :  { %v4688_v10 = vpop.f32.mrf.mxu1 }
 0xf3e   :  { %v4076_v11 = vmul.f32 -1.442695, %v3104_v9  ;;  %v4117_v9 = vld [vmem:[%s5084_s4 + $0x68] sm:$0xff]  ;;  %v4118_v10 = vld [vmem:[%s5084_s4 + $0x70] sm:$0xff] }
 0xf3f   :  { %v3106_v12 = vpop.f32.mrf.mxu1 }
 0xf40   :  { %4869 = vpow2.f32 %v4076_v11  ;;  %v4119_v12 = vld [vmem:[%s5084_s4 + $0x78] sm:$0xff] }
 0xf41   :  { %v4689_v13 = vpop.f32.mrf.mxu1 }
 0xf4d   :  { %v4870_v14 = vpop.eup %4869 }
 0xf4e   :  { %v3112_v15 = vadd.f32 1.0, %v4870_v14 }
 0xf50   :  { %4871 = vrcp.f32 %v3112_v15 }
 0xf5d   :  { %v5423_v17 = vpop.eup %4871 }
 0xf5e   :  { %4707 = vmatmul.mubr.msk.f32.vlgmr.msra.gmra.mxu0 %vm734_vm2, %v5423_v17  ;;  %4726 = vmatmul.mubr.msk.f32.vlgmr.msra.gmra.mxu1 %vm734_vm2, %v5423_v17 }
 0xf5f   :  { %4745 = vmatpush3.msra.mxu1 %v4110_v16  ;;  %4760 = vmatprep.mubr.msk.f32.mxu1 %vm4927_vm3, %v4926_v21 }
 0xf60   :  { %4746 = vmatprep.subr.mxu1 %v4926_v21  ;;  %4730 = vmatprep.mubr.msk.f32.mxu0 %vm1579_vm4, %v4078_v26 }
 0xf61   :  { %4747 = vmatpush3.msra.mxu1 %v4109_v18 }
 0xf62   :  { %4748 = vmatprep.subr.mxu1 %v4926_v21 }
 0xf63   :  { %4749 = vmatpush3.msra.mxu1 %v4108_v19 }
 0xf64   :  { %4750 = vmatprep.subr.mxu1 %v4926_v21 }
 0xf65   :  { %4751 = vmatpush3.msra.mxu1 %v4107_v20 }
 0xf66   :  { %4752 = vmatprep.subr.mxu1 %v4926_v21 }
 0xf67   :  { %4753 = vmatpush3.msra.mxu1 %v4106_v22 }
 0xf68   :  { %4754 = vmatprep.subr.mxu1 %v4926_v21 }
 0xf69   :  { %4755 = vmatpush3.msra.mxu1 %v4105_v23 }
 0xf6a   :  { %4756 = vmatprep.subr.mxu1 %v4926_v21 }
 0xf6b   :  { %4757 = vmatpush3.msra.mxu1 %v4104_v24 }
 0xf6c   :  { %4758 = vmatprep.subr.mxu1 %v4926_v21 }
 0xf6d   :  { %4759 = vmatpush3.msra.mxu1 %v4103_v25 }
 0xf6e   :  { %4761 = vmatmul.mubr.msk.f32.vlgmr.msra.gmra.mxu1 %vm734_vm2, %v5423_v17 }
 0xf6f   :  { %4792 = vmatprep.mubr.msk.f32.mxu1 %vm1579_vm4, %v4116_v52 }
0x101e   :  { %v3196_v27 = vpop.f32.mrf.mxu0  ;;  %v3280_v28 = vpop.f32.mrf.mxu1 }
0x101f   :  { %4728 = vmatprep.subr.mxu0 %v3280_v28 }
0x1020   :  { %v4708_v31 = vpop.f32.mrf.mxu0  ;;  %v4727_v32 = vpop.f32.mrf.mxu1  ;;  %4729 = vmatpush3.msra.mxu0 %v3280_v28 }
0x1021   :  { %4731 = vmatmul.mubr.msk.f32.vlgmr.msra.gmra.mxu0 %vm1579_vm4, %v4079_v29  ;;  %4736 = vmatprep.subr.mxu0 %v3196_v27 }
0x1022   :  { %4737 = vmatpush3.msra.mxu0 %v3196_v27  ;;  %4733 = vmatprep.mubr.msk.f32.mxu0 %vm1579_vm4, %v4080_v30 }
0x1025   :  { %4734 = vmatmul.mubr.msk.f32.gmra.mxu0 %vm1579_vm4, %v4081_v33 }
0x1026   :  { %4738 = vmatprep.mubr.msk.f32.mxu0 %vm1579_vm4, %v3115_v34 }
0x1029   :  { %4739 = vmatmul.mubr.msk.f32.vlgmr.msra.gmra.mxu0 %vm1579_vm4, %v3116_v35 }
0x102a   :  { %4741 = vmatprep.mubr.msk.f32.mxu0 %vm1579_vm4, %v3117_v36 }
0x102d   :  { %4742 = vmatmul.mubr.msk.f32.gmra.mxu0 %vm1579_vm4, %v3118_v37 }
0x102e   :  { %v3558_v39 = vpop.f32.mrf.mxu1  ;;  %4765 = vmatprep.mubr.msk.f32.mxu0 %vm1579_vm4, %v4099_v38 }
0x102f   :  { %4763 = vmatprep.subr.mxu0 %v3558_v39 }
0x1030   :  { %v4762_v43 = vpop.f32.mrf.mxu1  ;;  %4764 = vmatpush3.msra.mxu0 %v3558_v39 }
0x1031   :  { %4771 = vmatprep.subr.mxu0 %v4926_v21  ;;  %4766 = vmatmul.mubr.msk.f32.vlgmr.msra.gmra.mxu0 %vm1579_vm4, %v4100_v40 }
0x1032   :  { %4772 = vmatpush3.msra.mxu0 %v4127_v41  ;;  %4768 = vmatprep.mubr.msk.f32.mxu0 %vm1579_vm4, %v4101_v42 }
0x1033   :  { %4773 = vmatprep.subr.mxu0 %v4926_v21 }
0x1034   :  { %4774 = vmatpush3.msra.mxu0 %v4126_v44 }
0x1035   :  { %4775 = vmatprep.subr.mxu0 %v4926_v21  ;;  %4769 = vmatmul.mubr.msk.f32.gmra.mxu0 %vm1579_vm4, %v4102_v45 }
0x1036   :  { %4776 = vmatpush3.msra.mxu0 %v4125_v46  ;;  %4787 = vmatprep.mubr.msk.f32.mxu0 %vm4927_vm3, %v4926_v21 }
0x1037   :  { %4777 = vmatprep.subr.mxu0 %v4926_v21 }
0x1038   :  { %4778 = vmatpush3.msra.mxu0 %v4124_v47 }
0x1039   :  { %4779 = vmatprep.subr.mxu0 %v4926_v21 }
0x103a   :  { %4780 = vmatpush3.msra.mxu0 %v4123_v48 }
0x103b   :  { %4781 = vmatprep.subr.mxu0 %v4926_v21 }
0x103c   :  { %4782 = vmatpush3.msra.mxu0 %v4122_v49 }
0x103d   :  { %4783 = vmatprep.subr.mxu0 %v4926_v21 }
0x103e   :  { %4784 = vmatpush3.msra.mxu0 %v4121_v50 }
0x103f   :  { %4785 = vmatprep.subr.mxu0 %v4926_v21 }
0x1040   :  { %4786 = vmatpush3.msra.mxu0 %v4120_v51 }
0x1041   :  { %4788 = vmatmul.mubr.msk.f32.vlgmr.msra.gmra.mxu0 %vm734_vm2, %v5423_v17 }
0x10e1   :  { %v4732_v53 = vpop.f32.mrf.mxu0 }
0x10e3   :  { %v3362_v54 = vpop.f32.mrf.mxu0 }
0x10e5   :  { %v4735_v55 = vpop.f32.mrf.mxu0 }
0x10e7   :  { %v3372_v56 = vpop.f32.mrf.mxu0 }
0x10e9   :  { %v4740_v57 = vpop.f32.mrf.mxu0 }
0x10ea   :  { %v3465_v58 = vadd.f32 %v4740_v57, %v4732_v53 }
0x10eb   :  { %v3459_v59 = vpop.f32.mrf.mxu0 }
0x10ec   :  { %v3460_v60 = vadd.f32 %v3459_v59, %v3362_v54 }
0x10ed   :  { %v4743_v61 = vpop.f32.mrf.mxu0 }
0x10ee   :  { %v3475_v62 = vadd.f32 %v4743_v61, %v4735_v55 }
0x10ef   :  { %v3469_v21 = vpop.f32.mrf.mxu0 }
0x10f0   :  { %v3470_v63 = vadd.f32 %v3469_v21, %v3372_v56 }
0x10f1   :  { %v4767_v0 = vpop.f32.mrf.mxu0 }
0x10f2   :  { %v3660_v1 = vadd.f32 %v4767_v0, %v3465_v58 }
0x10f3   :  { %v3640_v2 = vpop.f32.mrf.mxu0 }
0x10f4   :  { %v3659_v3 = vadd.f32 %v3640_v2, %v3460_v60 }
0x10f5   :  { %v4770_v4 = vpop.f32.mrf.mxu0 }
0x10f6   :  { %v3662_v5 = vadd.f32 %v4770_v4, %v3475_v62 }
0x10f7   :  { %v3650_v6 = vpop.f32.mrf.mxu0 }
0x10f8   :  { %v3661_v7 = vadd.f32 %v3650_v6, %v3470_v63 }
0x1101   :  { %v3743_v8 = vpop.f32.mrf.mxu0 }
0x1102   :  { %4790 = vmatprep.subr.mxu1 %v3743_v8 }
0x1103   :  { %v4789_v11 = vpop.f32.mrf.mxu0  ;;  %4791 = vmatpush3.msra.mxu1 %v3743_v8 }
0x1104   :  { %4793 = vmatmul.mubr.msk.f32.vlgmr.msra.gmra.mxu1 %vm1579_vm4, %v4117_v9 }
0x1105   :  { %4795 = vmatprep.mubr.msk.f32.mxu1 %vm1579_vm4, %v4118_v10 }
0x1108   :  { %4796 = vmatmul.mubr.msk.f32.gmra.mxu1 %vm1579_vm4, %v4119_v12 }
0x11c4   :  { %v4794_v13 = vpop.f32.mrf.mxu1 }
0x11c5   :  { %v3845_v14 = vadd.f32 %v4794_v13, %v3660_v1 }
0x11c6   :  { %v3825_v15 = vpop.f32.mrf.mxu1 }
0x11c7   :  { %3849 = vst.msk [vmem:[#allocation2 + $0x8] sm:$0xff] %vm253_vm1, %v3845_v14  ;;  %v3844_v16 = vadd.f32 %v3825_v15, %v3659_v3 }
0x11c8   :  { %v4797_v17 = vpop.f32.mrf.mxu1 }
0x11c9   :  { %3848 = vst.msk [vmem:[#allocation2] sm:$0xff] %vm253_vm1, %v3844_v16  ;;  %v3847_v18 = vadd.f32 %v4797_v17, %v3662_v5 }
0x11ca   :  { %v3835_v19 = vpop.f32.mrf.mxu1 }
0x11cb   :  { %3851 = vst.msk [vmem:[#allocation2 + $0x18] sm:$0xff] %vm253_vm1, %v3847_v18  ;;  %v3846_v20 = vadd.f32 %v3835_v19, %v3661_v7 }
0x11cd   :  { %3850 = vst.msk [vmem:[#allocation2 + $0x10] sm:$0xff] %vm253_vm1, %v3846_v20 }
0x11ce   :  { %4884 = shalt.err (!%p4881_p4)
}
0x11cf   :  { %s4929_s4 = smov 128   ;;  %s4930_s22 = smov 8  }
0x11d0   :  { %3863 = dma.vmem_to_hbm [thread:$0]  %s3858_s12, 512, %s5094_s20, [#allocation3], %s4929_s4, %s4929_s4, %s4930_s22  }
0x11d1   :  { %4893 = dma.done.wait [#allocation3], 512  }
0x11d2   :  { %4894 = vsyncadd [#allocation3], 4294966784 }
0x11d3   :  { %3867 = vsyncpa [#allocation3], 1 }

</bundles_post_ra>
